<compile_context>
chip_gen: v7x
topology: tpu7x:2x2x1
jax: 0.10.0
libtpu: 0.0.40
codegen_flags: <defaults>
</compile_context>

<pallas_src>
import functools
import math

import jax
import jax.numpy as jnp
from jax.experimental import pallas as pl
from jax.experimental.pallas import tpu as pltpu


LANE = 128
SUBLANE = 8

_VMEM_LIMIT = 48 * 1024 * 1024          # scoped-VMEM cap handed to Mosaic (< v7x 64 MiB)
_VMEM_BUDGET = 36 * 1024 * 1024         # tile-selection working-set target (batch-safe)
_X_RESIDENT_MAX_BYTES = 4 * 1024 * 1024 # keep x fully resident when it is this small

# Tile caps (multiples of 128).  At production shapes (16384 / 1024 padded):
#   enc0     : tk<=8192, tn<=512  -> grid (2, 2), 8 MiB bf16 weight tiles
#   dec_last : tn<=2048           -> grid (8,),   4 MiB bf16 weight tiles
_TK_MAX_IN = 8192
_TN_MAX_IN = 512
_TN_MAX_OUT = 2048


def _pad_to(n, m):
    return ((n + m - 1) // m) * m


def _choose_tile(dim, max_tile):
    """Largest multiple of 128 that divides `dim` (itself a multiple of 128) and <= max_tile."""
    t = min(dim, max_tile)
    t -= t % LANE
    t = max(t, LANE)
    while dim % t != 0:
        t -= LANE
    return max(t, LANE)


def _select_tiles(M, K, N, tk_max, tn_max, x_itemsize):
    """Pick (tk, tn, x_resident) so the double-buffered working set fits _VMEM_BUDGET."""
    tk = _choose_tile(K, tk_max)
    tn = _choose_tile(N, tn_max)
    x_bytes = M * K * x_itemsize
    x_resident = x_bytes <= _X_RESIDENT_MAX_BYTES

    def est(tk_, tn_):
        w = 2 * tk_ * tn_ * 2                                   # bf16 weight tile, dbl-buffered
        xb = 2 * (x_bytes if x_resident else M * tk_ * x_itemsize)
        out = 2 * M * tn_ * 4                                   # output tile (f32 upper bound)
        acc = M * tn_ * 4                                       # f32 accumulator scratch
        return w + xb + out + acc + 2 * tn_ * 4

    while est(tk, tn) > _VMEM_BUDGET and tk > LANE:
        tk = _choose_tile(K, max(tk // 2, LANE))
    while est(tk, tn) > _VMEM_BUDGET and tn > LANE:
        tn = _choose_tile(N, max(tn // 2, LANE))
    return tk, tn, x_resident


def _softplus(y):
    # torch.nn.Softplus(beta=1, threshold=20):  y if y > 20 else log1p(exp(y))
    return jnp.where(y > 20.0, y, jnp.log1p(jnp.exp(jnp.minimum(y, 20.0))))


# ----------------------------------------------------------------------------
# Linear (+ optional Softplus) kernels for the two large layers.
# ----------------------------------------------------------------------------
def _acc_linear_kernel(x_ref, w_ref, b_ref, o_ref, acc_ref, *,
                       apply_softplus, tk, x_resident):
    """Grid = (N_tiles, K_tiles).  f32 accumulator; bias/activation on last K step."""
    k = pl.program_id(1)

    @pl.when(k == 0)
    def _():
        acc_ref[...] = jnp.zeros_like(acc_ref)

    if x_resident:
        x = x_ref[:, pl.ds(pl.multiple_of(k * tk, tk), tk)]     # x pinned in VMEM
    else:
        x = x_ref[...]
    acc_ref[...] += jnp.dot(x, w_ref[...], preferred_element_type=jnp.float32)

    @pl.when(k == pl.num_programs(1) - 1)
    def _():
        y = acc_ref[...] + b_ref[...]
        if apply_softplus:
            y = _softplus(y)
        o_ref[...] = y.astype(o_ref.dtype)


def _single_k_linear_kernel(x_ref, w_ref, b_ref, o_ref, *, apply_softplus):
    """Grid = (N_tiles,).  Single K block: no accumulator scratch, no pl.when."""
    y = jnp.dot(x_ref[...], w_ref[...], preferred_element_type=jnp.float32)
    y = y + b_ref[...]
    if apply_softplus:
        y = _softplus(y)
    o_ref[...] = y.astype(o_ref.dtype)


def tiled_linear(x, w, b, *, apply_softplus, out_dtype,
                 tk_max=_TK_MAX_IN, tn_max=_TN_MAX_IN):
    """y = x @ w + b (optionally Softplus). x:(M,K) bf16, w:(K,N) bf16, b:(1,N) f32."""
    M, K = x.shape
    Kw, N = w.shape
    assert K == Kw and b.shape == (1, N)
    tk, tn, x_resident = _select_tiles(M, K, N, tk_max, tn_max, x.dtype.itemsize)
    nk, nn = K // tk, N // tn

    if nk == 1:
        kernel = functools.partial(_single_k_linear_kernel,
                                   apply_softplus=apply_softplus)
        return pl.pallas_call(
            kernel,
            out_shape=jax.ShapeDtypeStruct((M, N), out_dtype),
            grid_spec=pltpu.PrefetchScalarGridSpec(
                num_scalar_prefetch=0,
                grid=(nn,),
                in_specs=[
                    pl.BlockSpec((M, K), lambda n: (0, 0)),
                    pl.BlockSpec((K, tn), lambda n: (0, n)),
                    pl.BlockSpec((1, tn), lambda n: (0, n)),
                ],
                out_specs=pl.BlockSpec((M, tn), lambda n: (0, n)),
            ),
            compiler_params=pltpu.CompilerParams(
                dimension_semantics=("parallel",),
                vmem_limit_bytes=_VMEM_LIMIT,
            ),
        )(x, w, b)

    if x_resident:
        x_spec = pl.BlockSpec((M, K), lambda n, k: (0, 0))       # constant block: DMA'd once
    else:
        x_spec = pl.BlockSpec((M, tk), lambda n, k: (0, k))
    kernel = functools.partial(_acc_linear_kernel,
                               apply_softplus=apply_softplus,
                               tk=tk, x_resident=x_resident)
    return pl.pallas_call(
        kernel,
        out_shape=jax.ShapeDtypeStruct((M, N), out_dtype),
        grid_spec=pltpu.PrefetchScalarGridSpec(
            num_scalar_prefetch=0,
            grid=(nn, nk),
            in_specs=[
                x_spec,
                pl.BlockSpec((tk, tn), lambda n, k: (k, n)),
                pl.BlockSpec((1, tn), lambda n, k: (0, n)),
            ],
            out_specs=pl.BlockSpec((M, tn), lambda n, k: (0, n)),
            scratch_shapes=[pltpu.VMEM((M, tn), jnp.float32)],
        ),
        compiler_params=pltpu.CompilerParams(
            dimension_semantics=("parallel", "arbitrary"),
            vmem_limit_bytes=_VMEM_LIMIT,
        ),
    )(x, w, b)


# ----------------------------------------------------------------------------
# All small middle layers fused into a single kernel; activations stay in VMEM.
# ----------------------------------------------------------------------------
def _fused_mid_kernel(*refs, acts):
    h_ref = refs[0]
    o_ref = refs[-1]
    wbs = refs[1:-1]
    h = h_ref[...].astype(jnp.float32)               # (M, F)
    for i, apply_softplus in enumerate(acts):
        w = wbs[2 * i][...]                          # bf16 (K, N)
        b = wbs[2 * i + 1][...]                      # f32  (1, N)
        y = jnp.dot(h.astype(jnp.bfloat16), w,
                    preferred_element_type=jnp.float32) + b
        h = _softplus(y) if apply_softplus else y
    o_ref[...] = h.astype(o_ref.dtype)


def fused_middle(h, mid_params, acts):
    args = [h]
    for (w, b) in mid_params:
        args.append(w)
        args.append(b)
    M = h.shape[0]
    n_out = mid_params[-1][0].shape[1]
    kernel = functools.partial(_fused_mid_kernel, acts=tuple(acts))
    return pl.pallas_call(
        kernel,
        out_shape=jax.ShapeDtypeStruct((M, n_out), jnp.bfloat16),
        compiler_params=pltpu.CompilerParams(vmem_limit_bytes=_VMEM_LIMIT),
    )(*args)


# ----------------------------------------------------------------------------
# Parameter construction (torch.nn.Linear default init), padded + bf16 weights.
# Weights stored pre-transposed as (in, out); padded rows/cols are exactly zero.
# ----------------------------------------------------------------------------
def _init_linear(key, fan_in, fan_out, k_pad, n_pad):
    kw, kb = jax.random.split(key)
    bound = 1.0 / math.sqrt(fan_in)
    w = jax.random.uniform(kw, (fan_in, fan_out), jnp.float32, -bound, bound)
    b = jax.random.uniform(kb, (fan_out,), jnp.float32, -bound, bound)
    w_pad = jnp.zeros((k_pad, n_pad), jnp.float32).at[:fan_in, :fan_out].set(w)
    b_pad = jnp.zeros((1, n_pad), jnp.float32).at[0, :fan_out].set(b)
    return w_pad.astype(jnp.bfloat16), b_pad


def build_autoencoder_params(key, space_dim, hidden_units, n_z):
    n_layers = len(hidden_units)
    enc_dims = [space_dim] + list(hidden_units) + [n_z]
    dec_dims = [n_z] + list(hidden_units[::-1]) + [space_dim]
    enc_pad = [_pad_to(d, LANE) for d in enc_dims]
    dec_pad = [_pad_to(d, LANE) for d in dec_dims]

    key, sub = jax.random.split(key)
    enc0 = _init_linear(sub, enc_dims[0], enc_dims[1], enc_pad[0], enc_pad[1])

    mid = []
    for i in range(1, n_layers + 1):                 # fc2_e .. fc{n+1}_e
        key, sub = jax.random.split(key)
        mid.append(_init_linear(sub, enc_dims[i], enc_dims[i + 1],
                                enc_pad[i], enc_pad[i + 1]))
    for i in range(n_layers):                        # fc1_d .. fc{n}_d
        key, sub = jax.random.split(key)
        mid.append(_init_linear(sub, dec_dims[i], dec_dims[i + 1],
                                dec_pad[i], dec_pad[i + 1]))

    key, sub = jax.random.split(key)                 # fc{n+1}_d
    dec_last = _init_linear(sub, dec_dims[n_layers], dec_dims[n_layers + 1],
                            dec_pad[n_layers], dec_pad[n_layers + 1])
    return {"enc0": enc0, "mid": mid, "dec_last": dec_last}


def _mid_acts(n_layers):
    # encoder: softplus on fc2_e..fc{n}_e, none on fc{n+1}_e (latent);
    # decoder: softplus on fc1_d..fc{n}_d.
    return tuple([True] * (n_layers - 1) + [False] + [True] * n_layers)


# ----------------------------------------------------------------------------
# Forward pass: pad -> big-in layer -> fused middle -> big-out layer -> slice.
# ----------------------------------------------------------------------------
def autoencoder_forward(params, x, *, space_dim,
                        tk_max_in=_TK_MAX_IN, tn_max_in=_TN_MAX_IN,
                        tn_max_out=_TN_MAX_OUT):
    batch, sd = x.shape
    w0, b0 = params["enc0"]
    k_pad = w0.shape[0]
    m_pad = _pad_to(batch, SUBLANE)
    # Pre-cast to bf16 once in the wrapper (no per-step VPU cast in the kernel).
    x_pad = jnp.zeros((m_pad, k_pad), jnp.bfloat16).at[:batch, :sd].set(
        x.astype(jnp.bfloat16))

    h = tiled_linear(x_pad, w0, b0, apply_softplus=True, out_dtype=jnp.bfloat16,
                     tk_max=tk_max_in, tn_max=tn_max_in)          # fc1_e + softplus
    acts = _mid_acts(len(params["mid"]) // 2)
    h = fused_middle(h, params["mid"], acts)                       # all small layers
    wl, bl = params["dec_last"]
    y = tiled_linear(h, wl, bl, apply_softplus=False, out_dtype=jnp.float32,
                     tk_max=tk_max_in, tn_max=tn_max_out)          # fc{n+1}_d
    return y[:batch, :space_dim]


# Pure-JAX reference with the SAME numerics as the kernel (shared padded bf16
# weights, bf16 activations into every matmul, f32 accumulation).  Note: this
# bounds kernel-vs-reference error, not error vs a full-f32 torch model.
def reference_forward(params, x, *, space_dim):
    def lin(h, wb, sp):
        w, b = wb
        y = jnp.dot(h.astype(jnp.bfloat16), w,
                    preferred_element_type=jnp.float32) + b
        return _softplus(y) if sp else y

    batch, sd = x.shape
    w0, _ = params["enc0"]
    m_pad = _pad_to(batch, SUBLANE)
    h = jnp.zeros((m_pad, w0.shape[0]), jnp.float32).at[:batch, :sd].set(x)
    h = lin(h, params["enc0"], True).astype(jnp.bfloat16)          # enc0 stores bf16
    hf = h.astype(jnp.float32)
    for wb, sp in zip(params["mid"], _mid_acts(len(params["mid"]) // 2)):
        hf = lin(hf, wb, sp)
    h = hf.astype(jnp.bfloat16)                                     # fused-middle stores bf16
    y = lin(h, params["dec_last"], False)
    return y[:batch, :space_dim]


if __name__ == "__main__":
    # Small shapes consistent with the module
    # (original: space_dim=16384, hidden_units=[1000, 200, 50, 50, 50], n_z=5).
    space_dim_t = 256
    hidden_units = [64, 32, 16, 16, 16]
    n_z = 5
    batch = 2

    key = jax.random.PRNGKey(0)
    k_params, k_x = jax.random.split(key)
    params = build_autoencoder_params(k_params, space_dim_t, hidden_units, n_z)
    x = jax.random.normal(k_x, (batch, space_dim_t), jnp.float32)

    y_ref = reference_forward(params, x, space_dim=space_dim_t)
    tol = 2e-2 * max(1.0, float(jnp.max(jnp.abs(y_ref))))

    # 1) Production tile caps (single-K-block fast path at these small shapes).
    fwd = jax.jit(functools.partial(autoencoder_forward, space_dim=space_dim_t))
    y = fwd(params, x)
    jax.block_until_ready(y)
    assert y.shape == (batch, space_dim_t)
    assert bool(jnp.all(jnp.isfinite(y)))
    err = float(jnp.max(jnp.abs(y - y_ref)))
    assert err < tol, f"single-K path: max abs err {err} >= {tol}"

    # 2) Small tile caps: exercises the K-tiled accumulator path (resident x +
    #    dynamic K slice) and a multi-block parallel N axis — the code path the
    #    production 16384-wide layers take.
    fwd_tiled = jax.jit(functools.partial(
        autoencoder_forward, space_dim=space_dim_t,
        tk_max_in=128, tn_max_in=128, tn_max_out=128))
    y2 = fwd_tiled(params, x)
    jax.block_until_ready(y2)
    err2 = float(jnp.max(jnp.abs(y2 - y_ref)))
    assert err2 < tol, f"tiled-K path: max abs err {err2} >= {tol}"

    print("KERNEL_OK")
</pallas_src>

<mosaic_0001>
module attributes {stable_mosaic.version = 11 : i64} {
  func.func @_single_k_linear_kernel(%arg0: i32, %arg1: memref<8x256xbf16, #tpu.memory_space<vmem>>, %arg2: memref<256x128xbf16, #tpu.memory_space<vmem>>, %arg3: memref<1x128xf32, #tpu.memory_space<vmem>>, %arg4: memref<8x128xbf16, #tpu.memory_space<vmem>>) attributes {dimension_semantics = [#tpu.dimension_semantics<parallel>], iteration_bounds = array<i64: 1>, scalar_prefetch = 0 : i64, scratch_operands = 0 : i64, tpu.core_type = #tpu.core_type<tc>, window_params = [{pipeline_mode = #tpu.pipeline_mode<synchronous>, transform_indices = @transform_0, window_bounds = array<i64: 8, 256>}, {transform_indices = @transform_1, window_bounds = array<i64: 256, 128>}, {transform_indices = @transform_2, window_bounds = array<i64: 1, 128>}, {transform_indices = @transform_3, window_bounds = array<i64: 8, 128>}]} {
    %c0 = arith.constant 0 : index
    %c0_0 = arith.constant 0 : index
    %0 = vector.load %arg1[%c0, %c0_0] : memref<8x256xbf16, #tpu.memory_space<vmem>>, vector<8x256xbf16>
    %c0_1 = arith.constant 0 : index
    %c0_2 = arith.constant 0 : index
    %1 = vector.load %arg2[%c0_1, %c0_2] : memref<256x128xbf16, #tpu.memory_space<vmem>>, vector<256x128xbf16>
    %cst = arith.constant dense<0.000000e+00> : vector<8x128xf32>
    %2 = tpu.matmul %0, %1, %cst {dimension_numbers = #tpu.dot_dimension_numbers<[1], [0], [0], [1], [0, 0, 1, 1], [], []>} : vector<8x256xbf16>, vector<256x128xbf16>, vector<8x128xf32> -> vector<8x128xf32>
    %c0_3 = arith.constant 0 : index
    %c0_4 = arith.constant 0 : index
    %3 = vector.load %arg3[%c0_3, %c0_4] : memref<1x128xf32, #tpu.memory_space<vmem>>, vector<1x128xf32>
    %4 = vector.broadcast %3 : vector<1x128xf32> to vector<8x128xf32>
    %5 = arith.addf %2, %4 : vector<8x128xf32>
    %cst_5 = arith.constant 2.000000e+01 : f32
    %6 = vector.broadcast %cst_5 : f32 to vector<8x128xf32>
    %7 = arith.cmpf ogt, %5, %6 : vector<8x128xf32>
    %cst_6 = arith.constant 2.000000e+01 : f32
    %8 = vector.broadcast %cst_6 : f32 to vector<8x128xf32>
    %9 = arith.minimumf %5, %8 : vector<8x128xf32>
    %10 = math.exp %9 : vector<8x128xf32>
    %11 = math.log1p %10 : vector<8x128xf32>
    %12 = arith.select %7, %5, %11 : vector<8x128xi1>, vector<8x128xf32>
    %13 = arith.truncf %12 : vector<8x128xf32> to vector<8x128xbf16>
    %c0_7 = arith.constant 0 : index
    %c0_8 = arith.constant 0 : index
    %14 = vector.load %arg4[%c0_7, %c0_8] : memref<8x128xbf16, #tpu.memory_space<vmem>>, vector<8x128xbf16>
    tpu.vector_store %arg4[%c0_7, %c0_8], %13 {strides = array<i32>} : memref<8x128xbf16, #tpu.memory_space<vmem>>, vector<8x128xbf16>,
    return
  }
  func.func @transform_0(%arg0: i32) -> (i32, i32) {
    %c0_i32 = arith.constant 0 : i32
    %c0_i32_0 = arith.constant 0 : i32
    %c0_i32_1 = arith.constant 0 : i32
    return %c0_i32, %c0_i32_0 : i32, i32
  }
  func.func @transform_1(%arg0: i32) -> (i32, i32) {
    %c0_i32 = arith.constant 0 : i32
    %c0_i32_0 = arith.constant 0 : i32
    return %c0_i32, %arg0 : i32, i32
  }
  func.func @transform_2(%arg0: i32) -> (i32, i32) {
    %c0_i32 = arith.constant 0 : i32
    %c0_i32_0 = arith.constant 0 : i32
    return %c0_i32, %arg0 : i32, i32
  }
  func.func @transform_3(%arg0: i32) -> (i32, i32) {
    %c0_i32 = arith.constant 0 : i32
    %c0_i32_0 = arith.constant 0 : i32
    return %c0_i32, %arg0 : i32, i32
  }
}

module attributes {stable_mosaic.version = 11 : i64} {
  func.func @_fused_mid_kernel(%arg0: memref<8x128xbf16, #tpu.memory_space<vmem>>, %arg1: memref<128x128xbf16, #tpu.memory_space<vmem>>, %arg2: memref<1x128xf32, #tpu.memory_space<vmem>>, %arg3: memref<128x128xbf16, #tpu.memory_space<vmem>>, %arg4: memref<1x128xf32, #tpu.memory_space<vmem>>, %arg5: memref<128x128xbf16, #tpu.memory_space<vmem>>, %arg6: memref<1x128xf32, #tpu.memory_space<vmem>>, %arg7: memref<128x128xbf16, #tpu.memory_space<vmem>>, %arg8: memref<1x128xf32, #tpu.memory_space<vmem>>, %arg9: memref<128x128xbf16, #tpu.memory_space<vmem>>, %arg10: memref<1x128xf32, #tpu.memory_space<vmem>>, %arg11: memref<128x128xbf16, #tpu.memory_space<vmem>>, %arg12: memref<1x128xf32, #tpu.memory_space<vmem>>, %arg13: memref<128x128xbf16, #tpu.memory_space<vmem>>, %arg14: memref<1x128xf32, #tpu.memory_space<vmem>>, %arg15: memref<128x128xbf16, #tpu.memory_space<vmem>>, %arg16: memref<1x128xf32, #tpu.memory_space<vmem>>, %arg17: memref<128x128xbf16, #tpu.memory_space<vmem>>, %arg18: memref<1x128xf32, #tpu.memory_space<vmem>>, %arg19: memref<128x128xbf16, #tpu.memory_space<vmem>>, %arg20: memref<1x128xf32, #tpu.memory_space<vmem>>, %arg21: memref<8x128xbf16, #tpu.memory_space<vmem>>) attributes {dimension_semantics = [], scalar_prefetch = 0 : i64, scratch_operands = 0 : i64, tpu.core_type = #tpu.core_type<tc>} {
    %c0 = arith.constant 0 : index
    %c0_0 = arith.constant 0 : index
    %0 = vector.load %arg0[%c0, %c0_0] : memref<8x128xbf16, #tpu.memory_space<vmem>>, vector<8x128xbf16>
    %1 = arith.extf %0 : vector<8x128xbf16> to vector<8x128xf32>
    %c0_1 = arith.constant 0 : index
    %c0_2 = arith.constant 0 : index
    %2 = vector.load %arg1[%c0_1, %c0_2] : memref<128x128xbf16, #tpu.memory_space<vmem>>, vector<128x128xbf16>
    %c0_3 = arith.constant 0 : index
    %c0_4 = arith.constant 0 : index
    %3 = vector.load %arg2[%c0_3, %c0_4] : memref<1x128xf32, #tpu.memory_space<vmem>>, vector<1x128xf32>
    %4 = arith.truncf %1 : vector<8x128xf32> to vector<8x128xbf16>
    %cst = arith.constant dense<0.000000e+00> : vector<8x128xf32>
    %5 = tpu.matmul %4, %2, %cst {dimension_numbers = #tpu.dot_dimension_numbers<[1], [0], [0], [1], [0, 0, 1, 1], [], []>} : vector<8x128xbf16>, vector<128x128xbf16>, vector<8x128xf32> -> vector<8x128xf32>
    %6 = vector.broadcast %3 : vector<1x128xf32> to vector<8x128xf32>
    %7 = arith.addf %5, %6 : vector<8x128xf32>
    %cst_5 = arith.constant 2.000000e+01 : f32
    %8 = vector.broadcast %cst_5 : f32 to vector<8x128xf32>
    %9 = arith.cmpf ogt, %7, %8 : vector<8x128xf32>
    %cst_6 = arith.constant 2.000000e+01 : f32
    %10 = vector.broadcast %cst_6 : f32 to vector<8x128xf32>
    %11 = arith.minimumf %7, %10 : vector<8x128xf32>
    %12 = math.exp %11 : vector<8x128xf32>
    %13 = math.log1p %12 : vector<8x128xf32>
    %14 = arith.select %9, %7, %13 : vector<8x128xi1>, vector<8x128xf32>
    %c0_7 = arith.constant 0 : index
    %c0_8 = arith.constant 0 : index
    %15 = vector.load %arg3[%c0_7, %c0_8] : memref<128x128xbf16, #tpu.memory_space<vmem>>, vector<128x128xbf16>
    %c0_9 = arith.constant 0 : index
    %c0_10 = arith.constant 0 : index
    %16 = vector.load %arg4[%c0_9, %c0_10] : memref<1x128xf32, #tpu.memory_space<vmem>>, vector<1x128xf32>
    %17 = arith.truncf %14 : vector<8x128xf32> to vector<8x128xbf16>
    %cst_11 = arith.constant dense<0.000000e+00> : vector<8x128xf32>
    %18 = tpu.matmul %17, %15, %cst_11 {dimension_numbers = #tpu.dot_dimension_numbers<[1], [0], [0], [1], [0, 0, 1, 1], [], []>} : vector<8x128xbf16>, vector<128x128xbf16>, vector<8x128xf32> -> vector<8x128xf32>
    %19 = vector.broadcast %16 : vector<1x128xf32> to vector<8x128xf32>
    %20 = arith.addf %18, %19 : vector<8x128xf32>
    %cst_12 = arith.constant 2.000000e+01 : f32
    %21 = vector.broadcast %cst_12 : f32 to vector<8x128xf32>
    %22 = arith.cmpf ogt, %20, %21 : vector<8x128xf32>
    %cst_13 = arith.constant 2.000000e+01 : f32
    %23 = vector.broadcast %cst_13 : f32 to vector<8x128xf32>
    %24 = arith.minimumf %20, %23 : vector<8x128xf32>
    %25 = math.exp %24 : vector<8x128xf32>
    %26 = math.log1p %25 : vector<8x128xf32>
    %27 = arith.select %22, %20, %26 : vector<8x128xi1>, vector<8x128xf32>
    %c0_14 = arith.constant 0 : index
    %c0_15 = arith.constant 0 : index
    %28 = vector.load %arg5[%c0_14, %c0_15] : memref<128x128xbf16, #tpu.memory_space<vmem>>, vector<128x128xbf16>
    %c0_16 = arith.constant 0 : index
    %c0_17 = arith.constant 0 : index
    %29 = vector.load %arg6[%c0_16, %c0_17] : memref<1x128xf32, #tpu.memory_space<vmem>>, vector<1x128xf32>
    %30 = arith.truncf %27 : vector<8x128xf32> to vector<8x128xbf16>
    %cst_18 = arith.constant dense<0.000000e+00> : vector<8x128xf32>
    %31 = tpu.matmul %30, %28, %cst_18 {dimension_numbers = #tpu.dot_dimension_numbers<[1], [0], [0], [1], [0, 0, 1, 1], [], []>} : vector<8x128xbf16>, vector<128x128xbf16>, vector<8x128xf32> -> vector<8x128xf32>
    %32 = vector.broadcast %29 : vector<1x128xf32> to vector<8x128xf32>
    %33 = arith.addf %31, %32 : vector<8x128xf32>
    %cst_19 = arith.constant 2.000000e+01 : f32
    %34 = vector.broadcast %cst_19 : f32 to vector<8x128xf32>
    %35 = arith.cmpf ogt, %33, %34 : vector<8x128xf32>
    %cst_20 = arith.constant 2.000000e+01 : f32
    %36 = vector.broadcast %cst_20 : f32 to vector<8x128xf32>
    %37 = arith.minimumf %33, %36 : vector<8x128xf32>
    %38 = math.exp %37 : vector<8x128xf32>
    %39 = math.log1p %38 : vector<8x128xf32>
    %40 = arith.select %35, %33, %39 : vector<8x128xi1>, vector<8x128xf32>
    %c0_21 = arith.constant 0 : index
    %c0_22 = arith.constant 0 : index
    %41 = vector.load %arg7[%c0_21, %c0_22] : memref<128x128xbf16, #tpu.memory_space<vmem>>, vector<128x128xbf16>
    %c0_23 = arith.constant 0 : index
    %c0_24 = arith.constant 0 : index
    %42 = vector.load %arg8[%c0_23, %c0_24] : memref<1x128xf32, #tpu.memory_space<vmem>>, vector<1x128xf32>
    %43 = arith.truncf %40 : vector<8x128xf32> to vector<8x128xbf16>
    %cst_25 = arith.constant dense<0.000000e+00> : vector<8x128xf32>
    %44 = tpu.matmul %43, %41, %cst_25 {dimension_numbers = #tpu.dot_dimension_numbers<[1], [0], [0], [1], [0, 0, 1, 1], [], []>} : vector<8x128xbf16>, vector<128x128xbf16>, vector<8x128xf32> -> vector<8x128xf32>
    %45 = vector.broadcast %42 : vector<1x128xf32> to vector<8x128xf32>
    %46 = arith.addf %44, %45 : vector<8x128xf32>
    %cst_26 = arith.constant 2.000000e+01 : f32
    %47 = vector.broadcast %cst_26 : f32 to vector<8x128xf32>
    %48 = arith.cmpf ogt, %46, %47 : vector<8x128xf32>
    %cst_27 = arith.constant 2.000000e+01 : f32
    %49 = vector.broadcast %cst_27 : f32 to vector<8x128xf32>
    %50 = arith.minimumf %46, %49 : vector<8x128xf32>
    %51 = math.exp %50 : vector<8x128xf32>
    %52 = math.log1p %51 : vector<8x128xf32>
    %53 = arith.select %48, %46, %52 : vector<8x128xi1>, vector<8x128xf32>
    %c0_28 = arith.constant 0 : index
    %c0_29 = arith.constant 0 : index
    %54 = vector.load %arg9[%c0_28, %c0_29] : memref<128x128xbf16, #tpu.memory_space<vmem>>, vector<128x128xbf16>
    %c0_30 = arith.constant 0 : index
    %c0_31 = arith.constant 0 : index
    %55 = vector.load %arg10[%c0_30, %c0_31] : memref<1x128xf32, #tpu.memory_space<vmem>>, vector<1x128xf32>
    %56 = arith.truncf %53 : vector<8x128xf32> to vector<8x128xbf16>
    %cst_32 = arith.constant dense<0.000000e+00> : vector<8x128xf32>
    %57 = tpu.matmul %56, %54, %cst_32 {dimension_numbers = #tpu.dot_dimension_numbers<[1], [0], [0], [1], [0, 0, 1, 1], [], []>} : vector<8x128xbf16>, vector<128x128xbf16>, vector<8x128xf32> -> vector<8x128xf32>
    %58 = vector.broadcast %55 : vector<1x128xf32> to vector<8x128xf32>
    %59 = arith.addf %57, %58 : vector<8x128xf32>
    %c0_33 = arith.constant 0 : index
    %c0_34 = arith.constant 0 : index
    %60 = vector.load %arg11[%c0_33, %c0_34] : memref<128x128xbf16, #tpu.memory_space<vmem>>, vector<128x128xbf16>
    %c0_35 = arith.constant 0 : index
    %c0_36 = arith.constant 0 : index
    %61 = vector.load %arg12[%c0_35, %c0_36] : memref<1x128xf32, #tpu.memory_space<vmem>>, vector<1x128xf32>
    %62 = arith.truncf %59 : vector<8x128xf32> to vector<8x128xbf16>
    %cst_37 = arith.constant dense<0.000000e+00> : vector<8x128xf32>
    %63 = tpu.matmul %62, %60, %cst_37 {dimension_numbers = #tpu.dot_dimension_numbers<[1], [0], [0], [1], [0, 0, 1, 1], [], []>} : vector<8x128xbf16>, vector<128x128xbf16>, vector<8x128xf32> -> vector<8x128xf32>
    %64 = vector.broadcast %61 : vector<1x128xf32> to vector<8x128xf32>
    %65 = arith.addf %63, %64 : vector<8x128xf32>
    %cst_38 = arith.constant 2.000000e+01 : f32
    %66 = vector.broadcast %cst_38 : f32 to vector<8x128xf32>
    %67 = arith.cmpf ogt, %65, %66 : vector<8x128xf32>
    %cst_39 = arith.constant 2.000000e+01 : f32
    %68 = vector.broadcast %cst_39 : f32 to vector<8x128xf32>
    %69 = arith.minimumf %65, %68 : vector<8x128xf32>
    %70 = math.exp %69 : vector<8x128xf32>
    %71 = math.log1p %70 : vector<8x128xf32>
    %72 = arith.select %67, %65, %71 : vector<8x128xi1>, vector<8x128xf32>
    %c0_40 = arith.constant 0 : index
    %c0_41 = arith.constant 0 : index
    %73 = vector.load %arg13[%c0_40, %c0_41] : memref<128x128xbf16, #tpu.memory_space<vmem>>, vector<128x128xbf16>
    %c0_42 = arith.constant 0 : index
    %c0_43 = arith.constant 0 : index
    %74 = vector.load %arg14[%c0_42, %c0_43] : memref<1x128xf32, #tpu.memory_space<vmem>>, vector<1x128xf32>
    %75 = arith.truncf %72 : vector<8x128xf32> to vector<8x128xbf16>
    %cst_44 = arith.constant dense<0.000000e+00> : vector<8x128xf32>
    %76 = tpu.matmul %75, %73, %cst_44 {dimension_numbers = #tpu.dot_dimension_numbers<[1], [0], [0], [1], [0, 0, 1, 1], [], []>} : vector<8x128xbf16>, vector<128x128xbf16>, vector<8x128xf32> -> vector<8x128xf32>
    %77 = vector.broadcast %74 : vector<1x128xf32> to vector<8x128xf32>
    %78 = arith.addf %76, %77 : vector<8x128xf32>
    %cst_45 = arith.constant 2.000000e+01 : f32
    %79 = vector.broadcast %cst_45 : f32 to vector<8x128xf32>
    %80 = arith.cmpf ogt, %78, %79 : vector<8x128xf32>
    %cst_46 = arith.constant 2.000000e+01 : f32
    %81 = vector.broadcast %cst_46 : f32 to vector<8x128xf32>
    %82 = arith.minimumf %78, %81 : vector<8x128xf32>
    %83 = math.exp %82 : vector<8x128xf32>
    %84 = math.log1p %83 : vector<8x128xf32>
    %85 = arith.select %80, %78, %84 : vector<8x128xi1>, vector<8x128xf32>
    %c0_47 = arith.constant 0 : index
    %c0_48 = arith.constant 0 : index
    %86 = vector.load %arg15[%c0_47, %c0_48] : memref<128x128xbf16, #tpu.memory_space<vmem>>, vector<128x128xbf16>
    %c0_49 = arith.constant 0 : index
    %c0_50 = arith.constant 0 : index
    %87 = vector.load %arg16[%c0_49, %c0_50] : memref<1x128xf32, #tpu.memory_space<vmem>>, vector<1x128xf32>
    %88 = arith.truncf %85 : vector<8x128xf32> to vector<8x128xbf16>
    %cst_51 = arith.constant dense<0.000000e+00> : vector<8x128xf32>
    %89 = tpu.matmul %88, %86, %cst_51 {dimension_numbers = #tpu.dot_dimension_numbers<[1], [0], [0], [1], [0, 0, 1, 1], [], []>} : vector<8x128xbf16>, vector<128x128xbf16>, vector<8x128xf32> -> vector<8x128xf32>
    %90 = vector.broadcast %87 : vector<1x128xf32> to vector<8x128xf32>
    %91 = arith.addf %89, %90 : vector<8x128xf32>
    %cst_52 = arith.constant 2.000000e+01 : f32
    %92 = vector.broadcast %cst_52 : f32 to vector<8x128xf32>
    %93 = arith.cmpf ogt, %91, %92 : vector<8x128xf32>
    %cst_53 = arith.constant 2.000000e+01 : f32
    %94 = vector.broadcast %cst_53 : f32 to vector<8x128xf32>
    %95 = arith.minimumf %91, %94 : vector<8x128xf32>
    %96 = math.exp %95 : vector<8x128xf32>
    %97 = math.log1p %96 : vector<8x128xf32>
    %98 = arith.select %93, %91, %97 : vector<8x128xi1>, vector<8x128xf32>
    %c0_54 = arith.constant 0 : index
    %c0_55 = arith.constant 0 : index
    %99 = vector.load %arg17[%c0_54, %c0_55] : memref<128x128xbf16, #tpu.memory_space<vmem>>, vector<128x128xbf16>
    %c0_56 = arith.constant 0 : index
    %c0_57 = arith.constant 0 : index
    %100 = vector.load %arg18[%c0_56, %c0_57] : memref<1x128xf32, #tpu.memory_space<vmem>>, vector<1x128xf32>
    %101 = arith.truncf %98 : vector<8x128xf32> to vector<8x128xbf16>
    %cst_58 = arith.constant dense<0.000000e+00> : vector<8x128xf32>
    %102 = tpu.matmul %101, %99, %cst_58 {dimension_numbers = #tpu.dot_dimension_numbers<[1], [0], [0], [1], [0, 0, 1, 1], [], []>} : vector<8x128xbf16>, vector<128x128xbf16>, vector<8x128xf32> -> vector<8x128xf32>
    %103 = vector.broadcast %100 : vector<1x128xf32> to vector<8x128xf32>
    %104 = arith.addf %102, %103 : vector<8x128xf32>
    %cst_59 = arith.constant 2.000000e+01 : f32
    %105 = vector.broadcast %cst_59 : f32 to vector<8x128xf32>
    %106 = arith.cmpf ogt, %104, %105 : vector<8x128xf32>
    %cst_60 = arith.constant 2.000000e+01 : f32
    %107 = vector.broadcast %cst_60 : f32 to vector<8x128xf32>
    %108 = arith.minimumf %104, %107 : vector<8x128xf32>
    %109 = math.exp %108 : vector<8x128xf32>
    %110 = math.log1p %109 : vector<8x128xf32>
    %111 = arith.select %106, %104, %110 : vector<8x128xi1>, vector<8x128xf32>
    %c0_61 = arith.constant 0 : index
    %c0_62 = arith.constant 0 : index
    %112 = vector.load %arg19[%c0_61, %c0_62] : memref<128x128xbf16, #tpu.memory_space<vmem>>, vector<128x128xbf16>
    %c0_63 = arith.constant 0 : index
    %c0_64 = arith.constant 0 : index
    %113 = vector.load %arg20[%c0_63, %c0_64] : memref<1x128xf32, #tpu.memory_space<vmem>>, vector<1x128xf32>
    %114 = arith.truncf %111 : vector<8x128xf32> to vector<8x128xbf16>
    %cst_65 = arith.constant dense<0.000000e+00> : vector<8x128xf32>
    %115 = tpu.matmul %114, %112, %cst_65 {dimension_numbers = #tpu.dot_dimension_numbers<[1], [0], [0], [1], [0, 0, 1, 1], [], []>} : vector<8x128xbf16>, vector<128x128xbf16>, vector<8x128xf32> -> vector<8x128xf32>
    %116 = vector.broadcast %113 : vector<1x128xf32> to vector<8x128xf32>
    %117 = arith.addf %115, %116 : vector<8x128xf32>
    %cst_66 = arith.constant 2.000000e+01 : f32
    %118 = vector.broadcast %cst_66 : f32 to vector<8x128xf32>
    %119 = arith.cmpf ogt, %117, %118 : vector<8x128xf32>
    %cst_67 = arith.constant 2.000000e+01 : f32
    %120 = vector.broadcast %cst_67 : f32 to vector<8x128xf32>
    %121 = arith.minimumf %117, %120 : vector<8x128xf32>
    %122 = math.exp %121 : vector<8x128xf32>
    %123 = math.log1p %122 : vector<8x128xf32>
    %124 = arith.select %119, %117, %123 : vector<8x128xi1>, vector<8x128xf32>
    %125 = arith.truncf %124 : vector<8x128xf32> to vector<8x128xbf16>
    %c0_68 = arith.constant 0 : index
    %c0_69 = arith.constant 0 : index
    %126 = vector.load %arg21[%c0_68, %c0_69] : memref<8x128xbf16, #tpu.memory_space<vmem>>, vector<8x128xbf16>
    tpu.vector_store %arg21[%c0_68, %c0_69], %125 {strides = array<i32>} : memref<8x128xbf16, #tpu.memory_space<vmem>>, vector<8x128xbf16>,
    return
  }
}

module attributes {stable_mosaic.version = 11 : i64} {
  func.func @_single_k_linear_kernel(%arg0: i32, %arg1: memref<8x128xbf16, #tpu.memory_space<vmem>>, %arg2: memref<128x256xbf16, #tpu.memory_space<vmem>>, %arg3: memref<1x256xf32, #tpu.memory_space<vmem>>, %arg4: memref<8x256xf32, #tpu.memory_space<vmem>>) attributes {dimension_semantics = [#tpu.dimension_semantics<parallel>], iteration_bounds = array<i64: 1>, scalar_prefetch = 0 : i64, scratch_operands = 0 : i64, tpu.core_type = #tpu.core_type<tc>, window_params = [{pipeline_mode = #tpu.pipeline_mode<synchronous>, transform_indices = @transform_0, window_bounds = array<i64: 8, 128>}, {transform_indices = @transform_1, window_bounds = array<i64: 128, 256>}, {transform_indices = @transform_2, window_bounds = array<i64: 1, 256>}, {transform_indices = @transform_3, window_bounds = array<i64: 8, 256>}]} {
    %c0 = arith.constant 0 : index
    %c0_0 = arith.constant 0 : index
    %0 = vector.load %arg1[%c0, %c0_0] : memref<8x128xbf16, #tpu.memory_space<vmem>>, vector<8x128xbf16>
    %c0_1 = arith.constant 0 : index
    %c0_2 = arith.constant 0 : index
    %1 = vector.load %arg2[%c0_1, %c0_2] : memref<128x256xbf16, #tpu.memory_space<vmem>>, vector<128x256xbf16>
    %cst = arith.constant dense<0.000000e+00> : vector<8x256xf32>
    %2 = tpu.matmul %0, %1, %cst {dimension_numbers = #tpu.dot_dimension_numbers<[1], [0], [0], [1], [0, 0, 1, 1], [], []>} : vector<8x128xbf16>, vector<128x256xbf16>, vector<8x256xf32> -> vector<8x256xf32>
    %c0_3 = arith.constant 0 : index
    %c0_4 = arith.constant 0 : index
    %3 = vector.load %arg3[%c0_3, %c0_4] : memref<1x256xf32, #tpu.memory_space<vmem>>, vector<1x256xf32>
    %4 = vector.broadcast %3 : vector<1x256xf32> to vector<8x256xf32>
    %5 = arith.addf %2, %4 : vector<8x256xf32>
    %c0_5 = arith.constant 0 : index
    %c0_6 = arith.constant 0 : index
    %6 = vector.load %arg4[%c0_5, %c0_6] : memref<8x256xf32, #tpu.memory_space<vmem>>, vector<8x256xf32>
    tpu.vector_store %arg4[%c0_5, %c0_6], %5 {strides = array<i32>} : memref<8x256xf32, #tpu.memory_space<vmem>>, vector<8x256xf32>,
    return
  }
  func.func @transform_0(%arg0: i32) -> (i32, i32) {
    %c0_i32 = arith.constant 0 : i32
    %c0_i32_0 = arith.constant 0 : i32
    %c0_i32_1 = arith.constant 0 : i32
    return %c0_i32, %c0_i32_0 : i32, i32
  }
  func.func @transform_1(%arg0: i32) -> (i32, i32) {
    %c0_i32 = arith.constant 0 : i32
    %c0_i32_0 = arith.constant 0 : i32
    return %c0_i32, %arg0 : i32, i32
  }
  func.func @transform_2(%arg0: i32) -> (i32, i32) {
    %c0_i32 = arith.constant 0 : i32
    %c0_i32_0 = arith.constant 0 : i32
    return %c0_i32, %arg0 : i32, i32
  }
  func.func @transform_3(%arg0: i32) -> (i32, i32) {
    %c0_i32 = arith.constant 0 : i32
    %c0_i32_0 = arith.constant 0 : i32
    return %c0_i32, %arg0 : i32, i32
  }
}

</mosaic_0001>

<bundles_post_ra>
// kernel: autoencoder_forward.3
= control target key start
LH: loop header
LB: loop body
LE: loop exit
PB: predicated region body
PF: predicated region fallthrough
CT: control target
= control target key end

     0   :  { %8 = vsyncpa [#allocation3], 0  ;;  %s415_s0 = inlined_call_operand.vmem [shape: bf16[8,256], index: 0, kind: input, shape index: {}]   ;;  %s416_s1 = inlined_call_operand.hbm [shape: bf16[256,128], index: 1, kind: input, shape index: {}]   ;;  %s417_s2 = inlined_call_operand.hbm [shape: f32[1,128], index: 2, kind: input, shape index: {}]   ;;  %s418_s3 = inlined_call_operand.vmem [shape: bf16[8,128], index: 3, kind: output, shape index: {}]  }
   0x1   :  { %9 = vsyncpa [#allocation5], 0  ;;  %s361_s12 = smov [#allocation2]   ;;  %s313_s16 = scalar_lea.hbm %s416_s1, 2048 }
   0x2   :  { %s17_s13 = sshll.u32 %s361_s12, 4  ;;  %p314_p0 = scmp.ne.s32.totalorder %s416_s1, %s313_s16  ;;  %s18_s13 = int_to_ptr.vmem [resolvable:$true] %s17_s13 }
   0x3   :  { %p317_p1 = scmp.lt.u32.totalorder %s313_s16, %s416_s1 }
   0x5   :  { %p319_p2 = pnand %p317_p1, %p314_p0 }
   0x7   :  { %322 = shalt.err (!%p319_p2)
}
   0x8   :  { %s323_s21 = scalar_lea.vmem %s18_s13, 2048  ;;  %p328_p4 = scmp.lt.s32.totalorder %s18_s13, %s18_s13 }
   0x9   :  { %p324_p3 = scmp.ne.s32.totalorder %s18_s13, %s323_s21  ;;  %p329_p5 = scmp.lt.s32.totalorder %s323_s21, %s323_s21 }
   0xb   :  { %p330_p6 = por %p329_p5, %p328_p4 }
   0xd   :  { %p331_p7 = pnand %p330_p6, %p324_p3 }
   0xf   :  { %334 = shalt.err (!%p331_p7)
}
  0x10   :  { %s362_s22 = smov 64   ;;  %s363_s23 = smov 4  }
  0x11   :  { %23 = dma.hbm_to_vmem [thread:$0]  %s416_s1, 2048, %s18_s13, [#allocation3], %s362_s22, %s362_s22, %s363_s23  }
  0x12   :  { %s364_s26 = smov [#allocation4]   ;;  %s335_s30 = scalar_lea.hbm %s417_s2, 16 }
  0x13   :  { %s30_s27 = sshll.u32 %s364_s26, 4  ;;  %p336_p8 = scmp.ne.s32.totalorder %s417_s2, %s335_s30  ;;  %s31_s27 = int_to_ptr.vmem [resolvable:$true] %s30_s27 }
  0x14   :  { %p339_p9 = scmp.lt.u32.totalorder %s335_s30, %s417_s2 }
  0x16   :  { %p341_p10 = pnand %p339_p9, %p336_p8 }
  0x18   :  { %344 = shalt.err (!%p341_p10)
}
  0x19   :  { %s345_s8 = scalar_lea.vmem %s31_s27, 16  ;;  %s349_s1 = scalar_lea.vmem %s31_s27, 32 }
  0x1a   :  { %p346_p11 = scmp.ne.s32.totalorder %s31_s27, %s345_s8  ;;  %p350_p12 = scmp.lt.s32.totalorder %s31_s27, %s31_s27 }
  0x1b   :  { %p351_p13 = scmp.lt.s32.totalorder %s349_s1, %s345_s8 }
  0x1d   :  { %p352_p0 = por %p351_p13, %p350_p12 }
  0x1f   :  { %p353_p1 = pnand %p352_p0, %p346_p11 }
  0x21   :  { %356 = shalt.err (!%p353_p1)
}
  0x22   :  { %33 = dma.hbm_to_vmem [thread:$0]  %s417_s2, 16, %s31_s27, [#allocation5]  }
  0x23   :  { %357 = dma.done.wait [#allocation3], 2048  }
  0x24   :  { %358 = vsyncadd [#allocation3], 4294965248 }
  0x25   :  { %359 = dma.done.wait [#allocation5], 16  }
  0x26   :  { %360 = vsyncadd [#allocation5], 4294967280  ;;  %v291_v0 = vld [vmem:[#allocation2 + $0x40] sm:$0xff]   ;;  %v293_v2 = vld [vmem:[#allocation2 + $0x48] sm:$0xff]  }
  0x27   :  { %v292_v1 = vld [vmem:[#allocation2] sm:$0xff]   ;;  %265 = vmatprep.subr.bf16.mxu0 %v291_v0  ;;  %v294_v3 = vld [vmem:[#allocation2 + $0x8] sm:$0xff]   ;;  %v295_v4 = vld [vmem:[#allocation2 + $0x50] sm:$0xff]  }
  0x28   :  { %266 = vmatpush3.bf16.msra.mxu0 %v292_v1  ;;  %v296_v5 = vld [vmem:[#allocation2 + $0x10] sm:$0xff]   ;;  %v297_v6 = vld [vmem:[#allocation2 + $0x58] sm:$0xff]   ;;  %v299_v8 = vld [vmem:[#allocation2 + $0x60] sm:$0xff]  }
  0x29   :  { %267 = vmatprep.subr.bf16.mxu0 %v293_v2  ;;  %v298_v7 = vld [vmem:[#allocation2 + $0x18] sm:$0xff]   ;;  %v300_v9 = vld [vmem:[#allocation2 + $0x20] sm:$0xff]   ;;  %v301_v10 = vld [vmem:[#allocation2 + $0x68] sm:$0xff]  }
  0x2a   :  { %v41_v11 = vld [vmem:[%s415_s0] sm:$0xff]  ;;  %v302_v13 = vld [vmem:[#allocation2 + $0x28] sm:$0xff]   ;;  %v303_v14 = vld [vmem:[#allocation2 + $0x70] sm:$0xff]  }
  0x2b   :  { %v248_v12 = vcombine.high %v41_v11, %v41_v11  ;;  %v304_v15 = vld [vmem:[#allocation2 + $0x30] sm:$0xff]   ;;  %v305_v16 = vld [vmem:[#allocation2 + $0x78] sm:$0xff]   ;;  %v247_v18 = vcombine.low %v41_v11, %v41_v11  ;;  %v246_v20 = vld [vmem:[#allocation4] ss:$0 sm:$0xff] }
  0x2c   :  { %268 = vmatpush3.bf16.msra.mxu0 %v294_v3  ;;  %v306_v17 = vld [vmem:[#allocation2 + $0x38] sm:$0xff]  }
  0x2d   :  { %269 = vmatprep.subr.bf16.mxu0 %v295_v4  ;;  %216 = vmatprep.mubr.bf16.mxu0 %v248_v12 }
  0x30   :  { %270 = vmatpush3.bf16.msra.mxu0 %v296_v5 }
  0x31   :  { %271 = vmatprep.subr.bf16.mxu0 %v297_v6 }
  0x34   :  { %272 = vmatpush3.bf16.msra.mxu0 %v298_v7 }
  0x35   :  { %273 = vmatprep.subr.bf16.mxu0 %v299_v8 }
  0x38   :  { %274 = vmatpush3.bf16.msra.mxu0 %v300_v9 }
  0x39   :  { %275 = vmatprep.subr.bf16.mxu0 %v301_v10 }
  0x3c   :  { %276 = vmatpush3.bf16.msra.mxu0 %v302_v13 }
  0x3d   :  { %277 = vmatprep.subr.bf16.mxu0 %v303_v14 }
  0x40   :  { %278 = vmatpush3.bf16.msra.mxu0 %v304_v15 }
  0x41   :  { %279 = vmatprep.subr.bf16.mxu0 %v305_v16 }
  0x44   :  { %280 = vmatpush3.bf16.msra.mxu0 %v306_v17 }
  0x47   :  { %217 = vmatmul.mubr.bf16.vlgmr.msra.gmra.mrb[0].mxu0 %v247_v18 }
 0x11a   :  { %v281_v19 = vpop.f32.mrb[0].mxu0 }
 0x11b   :  { %v282_v21 = vpop.f32.mrb[1].mxu0 }
 0x11c   :  { %v283_v22 = vadd.f32 %v282_v21, %v281_v19  ;;  %v284_v23 = vpop.f32.mrb[2].mxu0 }
 0x11d   :  { %v285_v24 = vpop.f32.mrb[3].mxu0 }
 0x11e   :  { %v219_v25 = vadd.f32 %v283_v22, %v246_v20 }
 0x120   :  { %v225_v26 = vmin.f32 %v219_v25, 20.0  ;;  %vm224_vm1 = vcmp.gt.f32.partialorder %v219_v25, 20.0 }
 0x122   :  { %v226_v27 = vmul.f32 1.442695, %v225_v26 }
 0x124   :  { %309 = vpow2.f32 %v226_v27 }
 0x12e   :  { %v310_v28 = vpop.eup %309 }
 0x12f   :  { %v228_v29 = vadd.f32 1.0, %v310_v28  ;;  %v231_v30 = vmul.f32 -0.5, %v310_v28  ;;  %v234_v32 = vand.u32 2147483647, %v310_v28 }
 0x131   :  { %311 = vlog2.f32 %v228_v29  ;;  %v232_v31 = vadd.f32 1.0, %v231_v30  ;;  %vm235_vm0 = vcmp.lt.f32.partialorder %v234_v32, 0.0004427343 }
 0x133   :  { %v233_v35 = vmul.f32 %v310_v28, %v232_v31 }
 0x13b   :  { %v312_v33 = vpop.eup %311 }
 0x13c   :  { %v230_v34 = vmul.f32 0.6931472, %v312_v33 }
 0x13e   :  { %v236_v36 = vsel %vm235_vm0, %v233_v35, %v230_v34 }
 0x13f   :  { %v237_v37 = vsel %vm224_vm1, %v219_v25, %v236_v36 }
 0x140   :  { %v238_v38 = vpack.c.bf16 %v237_v37, %v237_v37 }
 0x142   :  { %239 = vst [vmem:[%s418_s3] sm:$0xf] %v238_v38 }
 0x143   :  { %244 = vsyncpa [#allocation3], 1 }
 0x144   :  { %245 = vsyncpa [#allocation5], 1 }

// kernel: autoencoder_forward.5
= control target key start
LH: loop header
LB: loop body
LE: loop exit
PB: predicated region body
PF: predicated region fallthrough
CT: control target
= control target key end

     0   :  { %v212_v1 = vmov 0   ;;  %v34_v18 = vlaneseq  ;;  %s293_s1 = inlined_call_operand.vmem [shape: bf16[128,256], index: 1, kind: input, shape index: {}]   ;;  %s294_s0 = inlined_call_operand.vmem [shape: bf16[8,128], index: 0, kind: input, shape index: {}]   ;;  %s295_s2 = inlined_call_operand.vmem [shape: f32[1,256], index: 2, kind: input, shape index: {}]   ;;  %s296_s3 = inlined_call_operand.vmem [shape: f32[8,256], index: 3, kind: output, shape index: {}]  }
   0x1   :  { %v188_v0 = vld [vmem:[%s293_s1 + $0x4] ss:$8 sps:$4 sm:$0xff]   ;;  %156 = vmatprep.mubr.bf16.mxu0 %v212_v1  ;;  %v190_v2 = vld [vmem:[%s293_s1] ss:$8 sps:$4 sm:$0xff]   ;;  %v191_v3 = vld [vmem:[%s293_s1 + $0x14] ss:$8 sps:$4 sm:$0xff]  }
   0x2   :  { %124 = vmatprep.subr.bf16.mxu0 %v188_v0  ;;  %v193_v4 = vld [vmem:[%s293_s1 + $0x10] ss:$8 sps:$4 sm:$0xff]   ;;  %v194_v5 = vld [vmem:[%s293_s1 + $0x24] ss:$8 sps:$4 sm:$0xff]   ;;  %v196_v6 = vld [vmem:[%s293_s1 + $0x20] ss:$8 sps:$4 sm:$0xff]  }
   0x3   :  { %125 = vmatpush1.bf16.msra.mxu0 %v190_v2  ;;  %v197_v7 = vld [vmem:[%s293_s1 + $0x34] ss:$8 sps:$4 sm:$0xff]   ;;  %v199_v8 = vld [vmem:[%s293_s1 + $0x30] ss:$8 sps:$4 sm:$0xff]   ;;  %v200_v9 = vld [vmem:[%s293_s1 + $0x44] ss:$8 sps:$4 sm:$0xff]  }
   0x4   :  { %126 = vmatprep.subr.bf16.mxu0 %v191_v3  ;;  %v202_v10 = vld [vmem:[%s293_s1 + $0x40] ss:$8 sps:$4 sm:$0xff]   ;;  %v203_v11 = vld [vmem:[%s293_s1 + $0x54] ss:$8 sps:$4 sm:$0xff]   ;;  %v205_v12 = vld [vmem:[%s293_s1 + $0x50] ss:$8 sps:$4 sm:$0xff]  }
   0x5   :  { %v206_v13 = vld [vmem:[%s293_s1 + $0x64] ss:$8 sps:$4 sm:$0xff]   ;;  %v208_v14 = vld [vmem:[%s293_s1 + $0x60] ss:$8 sps:$4 sm:$0xff]   ;;  %v209_v15 = vld [vmem:[%s293_s1 + $0x74] ss:$8 sps:$4 sm:$0xff]  }
   0x6   :  { %v211_v16 = vld [vmem:[%s293_s1 + $0x70] ss:$8 sps:$4 sm:$0xff]   ;;  %v15_v17 = vld [vmem:[%s294_s0] sm:$0xf]  ;;  %v35_v19 = vshrl.u32 %v34_v18, 7 }
   0x7   :  { %127 = vmatpush1.bf16.msra.mxu0 %v193_v4  ;;  %v32_v21 = vld [vmem:[%s295_s2] sm:$0x3] }
   0x8   :  { %128 = vmatprep.subr.bf16.mxu0 %v194_v5  ;;  %v36_v20 = vsub.s32 0, %v35_v19  ;;  %v40_v22 = vsub.s32 1, %v35_v19 }
   0xa   :  { %v37_v23 = vrot.slane %v32_v21, %v36_v20  ;;  %v41_v24 = vrot.slane %v32_v21, %v40_v22 }
   0xb   :  { %129 = vmatpush1.bf16.msra.mxu0 %v196_v6 }
   0xc   :  { %130 = vmatprep.subr.bf16.mxu0 %v197_v7 }
   0xf   :  { %131 = vmatpush1.bf16.msra.mxu0 %v199_v8 }
  0x10   :  { %132 = vmatprep.subr.bf16.mxu0 %v200_v9 }
  0x13   :  { %133 = vmatpush1.bf16.msra.mxu0 %v202_v10 }
  0x14   :  { %134 = vmatprep.subr.bf16.mxu0 %v203_v11 }
  0x17   :  { %135 = vmatpush1.bf16.msra.mxu0 %v205_v12 }
  0x18   :  { %136 = vmatprep.subr.bf16.mxu0 %v206_v13 }
  0x1b   :  { %137 = vmatpush1.bf16.msra.mxu0 %v208_v14 }
  0x1c   :  { %138 = vmatprep.subr.bf16.mxu0 %v209_v15 }
  0x1f   :  { %139 = vmatpush1.bf16.msra.mxu0 %v211_v16 }
  0x22   :  { %157 = vmatmul.mubr.bf16.vlgmr.msra.gmra.mrb[0].mxu0 %v15_v17 }
  0xf5   :  { %v158_v25 = vpop.f32.mrb[0].mxu0 }
  0xf6   :  { %v159_v26 = vadd.f32 %v158_v25, %v37_v23  ;;  %v160_v27 = vpop.f32.mrb[1].mxu0 }
  0xf7   :  { %v161_v28 = vadd.f32 %v160_v27, %v41_v24  ;;  %v162_v29 = vpop.f32.mrb[2].mxu0 }
  0xf8   :  { %165 = vst [vmem:[%s296_s3] sm:$0xff] %v159_v26  ;;  %v163_v30 = vpop.f32.mrb[3].mxu0 }
  0xf9   :  { %166 = vst [vmem:[%s296_s3 + $0x8] sm:$0xff] %v161_v28 }

// kernel: autoencoder_forward.4
= control target key start
LH: loop header
LB: loop body
LE: loop exit
PB: predicated region body
PF: predicated region fallthrough
CT: control target
= control target key end

     0   :  { %s2691_s0 = inlined_call_operand.vmem [shape: bf16[8,128], index: 0, kind: input, shape index: {}]   ;;  %s2692_s1 = inlined_call_operand.vmem [shape: bf16[128,128], index: 1, kind: input, shape index: {}]   ;;  %s2693_s2 = inlined_call_operand.hbm [shape: f32[1,128], index: 2, kind: input, shape index: {}]   ;;  %s2694_s3 = inlined_call_operand.vmem [shape: bf16[128,128], index: 3, kind: input, shape index: {}]   ;;  %s2695_s4 = inlined_call_operand.hbm [shape: f32[1,128], index: 4, kind: input, shape index: {}]   ;;  %s2696_s5 = inlined_call_operand.hbm [shape: bf16[128,128], index: 5, kind: input, shape index: {}]   ;;  %s2697_s6 = inlined_call_operand.hbm [shape: f32[1,128], index: 6, kind: input, shape index: {}]   ;;  %s2698_s7 = inlined_call_operand.vmem [shape: bf16[128,128], index: 7, kind: input, shape index: {}]   ;;  %s2699_s8 = inlined_call_operand.vmem [shape: f32[1,128], index: 8, kind: input, shape index: {}]   ;;  %s2700_s9 = inlined_call_operand.hbm [shape: bf16[128,128], index: 9, kind: input, shape index: {}]   ;;  %s2701_s10 = inlined_call_operand.vmem [shape: f32[1,128], index: 10, kind: input, shape index: {}]   ;;  %s2702_s11 = inlined_call_operand.hbm [shape: bf16[128,128], index: 11, kind: input, shape index: {}]   ;;  %s2703_s12 = inlined_call_operand.vmem [shape: f32[1,128], index: 12, kind: input, shape index: {}]   ;;  %s2704_s13 = inlined_call_operand.hbm [shape: bf16[128,128], index: 13, kind: input, shape index: {}]   ;;  %s2705_s14 = inlined_call_operand.vmem [shape: f32[1,128], index: 14, kind: input, shape index: {}]   ;;  %s2706_s15 = inlined_call_operand.hbm [shape: bf16[128,128], index: 15, kind: input, shape index: {}]   ;;  %s2707_s16 = inlined_call_operand.vmem [shape: f32[1,128], index: 16, kind: input, shape index: {}]   ;;  %s2708_s17 = inlined_call_operand.hbm [shape: bf16[128,128], index: 17, kind: input, shape index: {}]   ;;  %s2709_s18 = inlined_call_operand.vmem [shape: f32[1,128], index: 18, kind: input, shape index: {}]   ;;  %s2710_s19 = inlined_call_operand.hbm [shape: bf16[128,128], index: 19, kind: input, shape index: {}]   ;;  %s2711_s20 = inlined_call_operand.vmem [shape: f32[1,128], index: 20, kind: input, shape index: {}]   ;;  %s2712_s21 = inlined_call_operand.vmem [shape: bf16[8,128], index: 21, kind: output, shape index: {}]  }
   0x1   :  { %2718 = sst [smem:[#allocation24_spill]] %s2691_s0 }
   0x2   :  { %2719 = sst [smem:[#allocation25_spill]] %s2692_s1 }
   0x3   :  { %2720 = sst [smem:[#allocation26_spill]] %s2693_s2 }
   0x4   :  { %2721 = sst [smem:[#allocation27_spill]] %s2694_s3 }
   0x5   :  { %2722 = sst [smem:[#allocation28_spill]] %s2695_s4 }
   0x6   :  { %2723 = sst [smem:[#allocation29_spill]] %s2696_s5 }
   0x7   :  { %26 = vsyncpa [#allocation3], 0 }
   0x8   :  { %27 = vsyncpa [#allocation5], 0 }
   0x9   :  { %28 = vsyncpa [#allocation8], 0 }
   0xa   :  { %29 = vsyncpa [#allocation11], 0 }
   0xb   :  { %30 = vsyncpa [#allocation14], 0 }
   0xc   :  { %31 = vsyncpa [#allocation17], 0  ;;  %s2199_s2 = smov [#allocation4]   ;;  %s2200_s26 = smov [#allocation7]  }
   0xd   :  { %s54_s25 = sshll.u32 %s2199_s2, 4  ;;  %s76_s27 = sshll.u32 %s2200_s26, 4  ;;  %s55_s25 = int_to_ptr.vmem [resolvable:$true] %s54_s25  ;;  %s77_s27 = int_to_ptr.vmem [resolvable:$true] %s76_s27 }
   0xe   :  { %s2724_s29 = sld [smem:[#allocation28_spill]] }
  0x14   :  { %s1967_s0 = scalar_lea.hbm %s2724_s29, 16 }
  0x15   :  { %p1968_p0 = scmp.ne.s32.totalorder %s2724_s29, %s1967_s0  ;;  %p1971_p1 = scmp.lt.u32.totalorder %s1967_s0, %s2724_s29 }
  0x17   :  { %p1973_p2 = pnand %p1971_p1, %p1968_p0 }
  0x19   :  { %1976 = shalt.err (!%p1973_p2)
}
  0x1a   :  { %s1977_s23 = scalar_lea.vmem %s55_s25, 16  ;;  %s1981_s1 = scalar_lea.vmem %s55_s25, 32 }
  0x1b   :  { %p1978_p3 = scmp.ne.s32.totalorder %s55_s25, %s1977_s23  ;;  %p1982_p4 = scmp.lt.s32.totalorder %s55_s25, %s55_s25 }
  0x1c   :  { %p1983_p5 = scmp.lt.s32.totalorder %s1981_s1, %s1977_s23 }
  0x1e   :  { %p1984_p6 = por %p1983_p5, %p1982_p4 }
  0x20   :  { %p1985_p7 = pnand %p1984_p6, %p1978_p3 }
  0x22   :  { %1988 = shalt.err (!%p1985_p7)
}
  0x23   :  { %57 = dma.hbm_to_vmem [thread:$0]  %s2724_s29, 16, %s55_s25, [#allocation5]  }
  0x24   :  { %s1989_s28 = scalar_lea.hbm %s2697_s6, 16 }
  0x25   :  { %p1990_p8 = scmp.ne.s32.totalorder %s2697_s6, %s1989_s28  ;;  %p1993_p9 = scmp.lt.u32.totalorder %s1989_s28, %s2697_s6 }
  0x27   :  { %p1995_p10 = pnand %p1993_p9, %p1990_p8 }
  0x29   :  { %1998 = shalt.err (!%p1995_p10)
}
  0x2a   :  { %s1999_s22 = scalar_lea.vmem %s77_s27, 16  ;;  %s2003_s23 = scalar_lea.vmem %s77_s27, 32 }
  0x2b   :  { %p2000_p11 = scmp.ne.s32.totalorder %s77_s27, %s1999_s22  ;;  %p2004_p12 = scmp.lt.s32.totalorder %s77_s27, %s77_s27 }
  0x2c   :  { %p2005_p13 = scmp.lt.s32.totalorder %s2003_s23, %s1999_s22 }
  0x2e   :  { %p2006_p0 = por %p2005_p13, %p2004_p12 }
  0x30   :  { %p2007_p1 = pnand %p2006_p0, %p2000_p11 }
  0x32   :  { %2010 = shalt.err (!%p2007_p1)
}
  0x33   :  { %79 = dma.hbm_to_vmem [thread:$0]  %s2697_s6, 16, %s77_s27, [#allocation8]  }
  0x34   :  { %s2201_s1 = smov [#allocation10]   ;;  %s2202_s2 = smov [#allocation13]  }
  0x35   :  { %s103_s24 = sshll.u32 %s2201_s1, 4  ;;  %s131_s26 = sshll.u32 %s2202_s2, 4  ;;  %s104_s24 = int_to_ptr.vmem [resolvable:$true] %s103_s24  ;;  %s2347_s26 = int_to_ptr.vmem [resolvable:$true] %s131_s26 }
  0x36   :  { %s2011_s4 = scalar_lea.hbm %s2702_s11, 1024 }
  0x37   :  { %p2012_p2 = scmp.ne.s32.totalorder %s2702_s11, %s2011_s4  ;;  %p2015_p3 = scmp.lt.u32.totalorder %s2011_s4, %s2702_s11 }
  0x39   :  { %p2017_p4 = pnand %p2015_p3, %p2012_p2 }
  0x3b   :  { %2020 = shalt.err (!%p2017_p4)
}
  0x3c   :  { %s2021_s6 = scalar_lea.vmem %s104_s24, 1024  ;;  %p2026_p6 = scmp.lt.s32.totalorder %s104_s24, %s104_s24 }
  0x3d   :  { %p2022_p5 = scmp.ne.s32.totalorder %s104_s24, %s2021_s6  ;;  %p2027_p7 = scmp.lt.s32.totalorder %s2021_s6, %s2021_s6 }
  0x3f   :  { %p2028_p8 = por %p2027_p7, %p2026_p6 }
  0x41   :  { %p2029_p9 = pnand %p2028_p8, %p2022_p5 }
  0x43   :  { %2032 = shalt.err (!%p2029_p9)
}
  0x44   :  { %s2203_s27 = smov 64   ;;  %s2204_s23 = smov 4  }
  0x45   :  { %109 = dma.hbm_to_vmem [thread:$0]  %s2702_s11, 1024, %s104_s24, [#allocation11], %s2203_s27, %s2203_s27, %s2204_s23  }
  0x46   :  { %s2033_s3 = scalar_lea.hbm %s2706_s15, 1024 }
  0x47   :  { %p2034_p10 = scmp.ne.s32.totalorder %s2706_s15, %s2033_s3  ;;  %p2037_p11 = scmp.lt.u32.totalorder %s2033_s3, %s2706_s15 }
  0x49   :  { %p2039_p12 = pnand %p2037_p11, %p2034_p10 }
  0x4b   :  { %2042 = shalt.err (!%p2039_p12)
}
  0x4c   :  { %s2043_s5 = scalar_lea.vmem %s2347_s26, 1024  ;;  %p2048_p0 = scmp.lt.s32.totalorder %s2347_s26, %s2347_s26 }
  0x4d   :  { %p2044_p13 = scmp.ne.s32.totalorder %s2347_s26, %s2043_s5  ;;  %p2049_p1 = scmp.lt.s32.totalorder %s2043_s5, %s2043_s5 }
  0x4f   :  { %p2050_p2 = por %p2049_p1, %p2048_p0 }
  0x51   :  { %p2051_p3 = pnand %p2050_p2, %p2044_p13 }
  0x53   :  { %2054 = shalt.err (!%p2051_p3)
}
  0x54   :  { %137 = dma.hbm_to_vmem [thread:$0]  %s2706_s15, 1024, %s2347_s26, [#allocation14], %s2203_s27, %s2203_s27, %s2204_s23  }
  0x55   :  { %s2205_s22 = smov [#allocation2]   ;;  %s2206_s25 = smov [#allocation6]  }
  0x56   :  { %s42_s6 = sshll.u32 %s2205_s22, 4  ;;  %s63_s29 = sshll.u32 %s2206_s25, 4  ;;  %s43_s6 = int_to_ptr.vmem [resolvable:$true] %s42_s6  ;;  %s2384_s29 = int_to_ptr.vmem [resolvable:$true] %s63_s29 }
  0x57   :  { %s2725_s3 = sld [smem:[#allocation26_spill]] }
  0x5d   :  { %s2055_s28 = scalar_lea.hbm %s2725_s3, 16 }
  0x5e   :  { %p2056_p4 = scmp.ne.s32.totalorder %s2725_s3, %s2055_s28  ;;  %p2059_p5 = scmp.lt.u32.totalorder %s2055_s28, %s2725_s3 }
  0x60   :  { %p2061_p6 = pnand %p2059_p5, %p2056_p4 }
  0x62   :  { %2064 = shalt.err (!%p2061_p6)
}
  0x63   :  { %s2065_s15 = scalar_lea.vmem %s43_s6, 16  ;;  %s2069_s26 = scalar_lea.vmem %s43_s6, 32 }
  0x64   :  { %p2066_p7 = scmp.ne.s32.totalorder %s43_s6, %s2065_s15  ;;  %p2070_p8 = scmp.lt.s32.totalorder %s43_s6, %s43_s6 }
  0x65   :  { %p2071_p9 = scmp.lt.s32.totalorder %s2069_s26, %s2065_s15 }
  0x67   :  { %p2072_p10 = por %p2071_p9, %p2070_p8 }
  0x69   :  { %p2073_p11 = pnand %p2072_p10, %p2066_p7 }
  0x6b   :  { %2076 = shalt.err (!%p2073_p11)
}
  0x6c   :  { %45 = dma.hbm_to_vmem [thread:$0]  %s2725_s3, 16, %s43_s6, [#allocation3]  }
  0x6d   :  { %s2726_s1 = sld [smem:[#allocation29_spill]] }
  0x73   :  { %s2077_s2 = scalar_lea.hbm %s2726_s1, 1024 }
  0x74   :  { %p2078_p12 = scmp.ne.s32.totalorder %s2726_s1, %s2077_s2  ;;  %p2081_p13 = scmp.lt.u32.totalorder %s2077_s2, %s2726_s1 }
  0x76   :  { %p2083_p0 = pnand %p2081_p13, %p2078_p12 }
  0x78   :  { %2086 = shalt.err (!%p2083_p0)
}
  0x79   :  { %s2087_s5 = scalar_lea.vmem %s2384_s29, 1024  ;;  %p2092_p2 = scmp.lt.s32.totalorder %s2384_s29, %s2384_s29 }
  0x7a   :  { %p2088_p1 = scmp.ne.s32.totalorder %s2384_s29, %s2087_s5  ;;  %p2093_p3 = scmp.lt.s32.totalorder %s2087_s5, %s2087_s5 }
  0x7c   :  { %p2094_p4 = por %p2093_p3, %p2092_p2 }
  0x7e   :  { %p2095_p5 = pnand %p2094_p4, %p2088_p1 }
  0x80   :  { %2098 = shalt.err (!%p2095_p5)
}
  0x81   :  { %69 = dma.hbm_to_vmem [thread:$0]  %s2726_s1, 1024, %s2384_s29, [#allocation5], %s2203_s27, %s2203_s27, %s2204_s23  }
  0x82   :  { %s2207_s15 = smov [#allocation9]   ;;  %s2208_s11 = smov [#allocation12]  }
  0x83   :  { %s89_s26 = sshll.u32 %s2207_s15, 4  ;;  %s117_s24 = sshll.u32 %s2208_s11, 4  ;;  %s90_s26 = int_to_ptr.vmem [resolvable:$true] %s89_s26  ;;  %s2418_s24 = int_to_ptr.vmem [resolvable:$true] %s117_s24 }
  0x84   :  { %s2099_s2 = scalar_lea.hbm %s2700_s9, 1024 }
  0x85   :  { %p2100_p6 = scmp.ne.s32.totalorder %s2700_s9, %s2099_s2  ;;  %p2103_p7 = scmp.lt.u32.totalorder %s2099_s2, %s2700_s9 }
  0x87   :  { %p2105_p8 = pnand %p2103_p7, %p2100_p6 }
  0x89   :  { %2108 = shalt.err (!%p2105_p8)
}
  0x8a   :  { %s2109_s29 = scalar_lea.vmem %s90_s26, 1024  ;;  %p2114_p10 = scmp.lt.s32.totalorder %s90_s26, %s90_s26 }
  0x8b   :  { %p2110_p9 = scmp.ne.s32.totalorder %s90_s26, %s2109_s29  ;;  %p2115_p11 = scmp.lt.s32.totalorder %s2109_s29, %s2109_s29 }
  0x8d   :  { %p2116_p12 = por %p2115_p11, %p2114_p10 }
  0x8f   :  { %p2117_p13 = pnand %p2116_p12, %p2110_p9 }
  0x91   :  { %2120 = shalt.err (!%p2117_p13)
}
  0x92   :  { %95 = dma.hbm_to_vmem [thread:$0]  %s2700_s9, 1024, %s90_s26, [#allocation8], %s2203_s27, %s2203_s27, %s2204_s23  }
  0x93   :  { %s2121_s15 = scalar_lea.hbm %s2704_s13, 1024 }
  0x94   :  { %p2122_p0 = scmp.ne.s32.totalorder %s2704_s13, %s2121_s15  ;;  %p2125_p1 = scmp.lt.u32.totalorder %s2121_s15, %s2704_s13 }
  0x96   :  { %p2127_p2 = pnand %p2125_p1, %p2122_p0 }
  0x98   :  { %2130 = shalt.err (!%p2127_p2)
}
  0x99   :  { %s2131_s4 = scalar_lea.vmem %s2418_s24, 1024  ;;  %p2136_p4 = scmp.lt.s32.totalorder %s2418_s24, %s2418_s24 }
  0x9a   :  { %p2132_p3 = scmp.ne.s32.totalorder %s2418_s24, %s2131_s4  ;;  %p2137_p5 = scmp.lt.s32.totalorder %s2131_s4, %s2131_s4 }
  0x9c   :  { %p2138_p6 = por %p2137_p5, %p2136_p4 }
  0x9e   :  { %p2139_p7 = pnand %p2138_p6, %p2132_p3 }
  0xa0   :  { %2142 = shalt.err (!%p2139_p7)
}
  0xa1   :  { %123 = dma.hbm_to_vmem [thread:$0]  %s2704_s13, 1024, %s2418_s24, [#allocation11], %s2203_s27, %s2203_s27, %s2204_s23  }
  0xa2   :  { %s2209_s28 = smov [#allocation15]   ;;  %s2210_s30 = smov [#allocation16]  }
  0xa3   :  { %s145_s0 = sshll.u32 %s2209_s28, 4  ;;  %s159_s29 = sshll.u32 %s2210_s30, 4  ;;  %s146_s0 = int_to_ptr.vmem [resolvable:$true] %s145_s0  ;;  %s2455_s29 = int_to_ptr.vmem [resolvable:$true] %s159_s29 }
  0xa4   :  { %s2143_s6 = scalar_lea.hbm %s2708_s17, 1024 }
  0xa5   :  { %p2144_p8 = scmp.ne.s32.totalorder %s2708_s17, %s2143_s6  ;;  %p2147_p9 = scmp.lt.u32.totalorder %s2143_s6, %s2708_s17 }
  0xa7   :  { %p2149_p10 = pnand %p2147_p9, %p2144_p8 }
  0xa9   :  { %2152 = shalt.err (!%p2149_p10)
}
  0xaa   :  { %s2153_s13 = scalar_lea.vmem %s146_s0, 1024  ;;  %p2158_p12 = scmp.lt.s32.totalorder %s146_s0, %s146_s0 }
  0xab   :  { %p2154_p11 = scmp.ne.s32.totalorder %s146_s0, %s2153_s13  ;;  %p2159_p13 = scmp.lt.s32.totalorder %s2153_s13, %s2153_s13 }
  0xad   :  { %p2160_p0 = por %p2159_p13, %p2158_p12 }
  0xaf   :  { %p2161_p1 = pnand %p2160_p0, %p2154_p11 }
  0xb1   :  { %2164 = shalt.err (!%p2161_p1)
}
  0xb2   :  { %151 = dma.hbm_to_vmem [thread:$0]  %s2708_s17, 1024, %s146_s0, [#allocation14], %s2203_s27, %s2203_s27, %s2204_s23  }
  0xb3   :  { %s2165_s9 = scalar_lea.hbm %s2710_s19, 1024 }
  0xb4   :  { %p2166_p2 = scmp.ne.s32.totalorder %s2710_s19, %s2165_s9  ;;  %p2169_p3 = scmp.lt.u32.totalorder %s2165_s9, %s2710_s19 }
  0xb6   :  { %p2171_p4 = pnand %p2169_p3, %p2166_p2 }
  0xb8   :  { %2174 = shalt.err (!%p2171_p4)
}
  0xb9   :  { %s2175_s5 = scalar_lea.vmem %s2455_s29, 1024  ;;  %p2180_p6 = scmp.lt.s32.totalorder %s2455_s29, %s2455_s29 }
  0xba   :  { %p2176_p5 = scmp.ne.s32.totalorder %s2455_s29, %s2175_s5  ;;  %p2181_p7 = scmp.lt.s32.totalorder %s2175_s5, %s2175_s5 }
  0xbc   :  { %p2182_p8 = por %p2181_p7, %p2180_p6 }
  0xbe   :  { %p2183_p9 = pnand %p2182_p8, %p2176_p5 }
  0xc0   :  { %2186 = shalt.err (!%p2183_p9)
}
  0xc1   :  { %165 = dma.hbm_to_vmem [thread:$0]  %s2710_s19, 1024, %s2455_s29, [#allocation17], %s2203_s27, %s2203_s27, %s2204_s23  }
  0xc2   :  { %2187 = dma.done.wait [#allocation3], 16  }
  0xc3   :  { %2188 = vsyncadd [#allocation3], 4294967280 }
  0xc4   :  { %2189 = dma.done.wait [#allocation5], 1040  }
  0xc5   :  { %2190 = vsyncadd [#allocation5], 4294966256 }
  0xc6   :  { %2191 = dma.done.wait [#allocation8], 1040  }
  0xc7   :  { %2192 = vsyncadd [#allocation8], 4294966256 }
  0xc8   :  { %2193 = dma.done.wait [#allocation11], 2048  }
  0xc9   :  { %2194 = vsyncadd [#allocation11], 4294965248 }
  0xca   :  { %2195 = dma.done.wait [#allocation14], 2048  }
  0xcb   :  { %2196 = vsyncadd [#allocation14], 4294965248 }
  0xcc   :  { %2197 = dma.done.wait [#allocation17], 1024  }
  0xcd   :  { %2198 = vsyncadd [#allocation17], 4294966272  ;;  %v2211_v0 = vmov 0.0   ;;  %vm2212_vm0 = vmmov 0   ;;  %s2727_s23 = sld [smem:[#allocation25_spill]]  ;;  %s2728_s5 = sld [smem:[#allocation24_spill]] }
  0xce   :  { %1637 = vmatprep.subr.bf16.mxu0 %v2211_v0  ;;  %1653 = vmatprep.mubr.msk.bf16.mxu0 %vm2212_vm0, %v2211_v0  ;;  %s2729_s19 = sld [smem:[#allocation27_spill]]  ;;  %v1457_v18 = vld [vmem:[#allocation2] ss:$0 sm:$0xff]  ;;  %v1867_v37 = vld [vmem:[#allocation6] sm:$0xff]   ;;  %v1868_v38 = vld [vmem:[#allocation6 + $0x8] sm:$0xff]  }
  0xcf   :  { %1657 = vmatprep.subr.bf16.mxu1 %v2211_v0  ;;  %1673 = vmatprep.mubr.msk.bf16.mxu1 %vm2212_vm0, %v2211_v0  ;;  %v1869_v39 = vld [vmem:[#allocation6 + $0x10] sm:$0xff]   ;;  %v1870_v40 = vld [vmem:[#allocation6 + $0x18] sm:$0xff]   ;;  %v1871_v41 = vld [vmem:[#allocation6 + $0x20] sm:$0xff]  }
  0xd0   :  { %v1872_v42 = vld [vmem:[#allocation6 + $0x28] sm:$0xff]   ;;  %v1873_v43 = vld [vmem:[#allocation6 + $0x30] sm:$0xff]   ;;  %v1874_v44 = vld [vmem:[#allocation6 + $0x38] sm:$0xff]  }
  0xd1   :  { %v1466_v45 = vld [vmem:[#allocation4] ss:$0 sm:$0xff] }
  0xd3   :  { %v1851_v1 = vld [vmem:[%s2727_s23] sm:$0xff]   ;;  %v1852_v2 = vld [vmem:[%s2727_s23 + $0x8] sm:$0xff]   ;;  %v1853_v3 = vld [vmem:[%s2727_s23 + $0x10] sm:$0xff]  }
  0xd4   :  { %1638 = vmatpush3.bf16.msra.mxu0 %v1851_v1  ;;  %v1854_v4 = vld [vmem:[%s2727_s23 + $0x18] sm:$0xff]   ;;  %v1855_v5 = vld [vmem:[%s2727_s23 + $0x20] sm:$0xff]   ;;  %v1856_v6 = vld [vmem:[%s2727_s23 + $0x28] sm:$0xff]  }
  0xd5   :  { %1639 = vmatprep.subr.bf16.mxu0 %v2211_v0  ;;  %v1857_v7 = vld [vmem:[%s2727_s23 + $0x30] sm:$0xff]   ;;  %v1858_v8 = vld [vmem:[%s2727_s23 + $0x38] sm:$0xff]   ;;  %v199_v9 = vld [vmem:[%s2728_s5] sm:$0xf] }
  0xd6   :  { %v1859_v10 = vld [vmem:[%s2729_s19] sm:$0xff]   ;;  %v1860_v11 = vld [vmem:[%s2729_s19 + $0x8] sm:$0xff]   ;;  %v1861_v12 = vld [vmem:[%s2729_s19 + $0x10] sm:$0xff]  }
  0xd7   :  { %1658 = vmatpush3.bf16.msra.mxu1 %v1859_v10  ;;  %v1862_v13 = vld [vmem:[%s2729_s19 + $0x18] sm:$0xff]   ;;  %v1863_v14 = vld [vmem:[%s2729_s19 + $0x20] sm:$0xff]   ;;  %v1864_v15 = vld [vmem:[%s2729_s19 + $0x28] sm:$0xff]  }
  0xd8   :  { %1640 = vmatpush3.bf16.msra.mxu0 %v1852_v2  ;;  %1659 = vmatprep.subr.bf16.mxu1 %v2211_v0  ;;  %v1865_v16 = vld [vmem:[%s2729_s19 + $0x30] sm:$0xff]   ;;  %v1866_v17 = vld [vmem:[%s2729_s19 + $0x38] sm:$0xff]   ;;  %v1875_v1 = vld [vmem:[%s2698_s7] sm:$0xff]  }
  0xd9   :  { %1641 = vmatprep.subr.bf16.mxu0 %v2211_v0  ;;  %v1876_v2 = vld [vmem:[%s2698_s7 + $0x8] sm:$0xff]  }
  0xdb   :  { %1660 = vmatpush3.bf16.msra.mxu1 %v1860_v11 }
  0xdc   :  { %1642 = vmatpush3.bf16.msra.mxu0 %v1853_v3  ;;  %1661 = vmatprep.subr.bf16.mxu1 %v2211_v0  ;;  %v1877_v3 = vld [vmem:[%s2698_s7 + $0x10] sm:$0xff]  }
  0xdd   :  { %1643 = vmatprep.subr.bf16.mxu0 %v2211_v0 }
  0xdf   :  { %1662 = vmatpush3.bf16.msra.mxu1 %v1861_v12 }
  0xe0   :  { %1644 = vmatpush3.bf16.msra.mxu0 %v1854_v4  ;;  %1663 = vmatprep.subr.bf16.mxu1 %v2211_v0  ;;  %v1878_v4 = vld [vmem:[%s2698_s7 + $0x18] sm:$0xff]  }
  0xe1   :  { %1645 = vmatprep.subr.bf16.mxu0 %v2211_v0 }
  0xe3   :  { %1664 = vmatpush3.bf16.msra.mxu1 %v1862_v13 }
  0xe4   :  { %1646 = vmatpush3.bf16.msra.mxu0 %v1855_v5  ;;  %1665 = vmatprep.subr.bf16.mxu1 %v2211_v0  ;;  %v1879_v5 = vld [vmem:[%s2698_s7 + $0x20] sm:$0xff]  }
  0xe5   :  { %1647 = vmatprep.subr.bf16.mxu0 %v2211_v0 }
  0xe7   :  { %1666 = vmatpush3.bf16.msra.mxu1 %v1863_v14 }
  0xe8   :  { %1648 = vmatpush3.bf16.msra.mxu0 %v1856_v6  ;;  %1667 = vmatprep.subr.bf16.mxu1 %v2211_v0  ;;  %v1880_v6 = vld [vmem:[%s2698_s7 + $0x28] sm:$0xff]  }
  0xe9   :  { %1649 = vmatprep.subr.bf16.mxu0 %v2211_v0 }
  0xeb   :  { %1668 = vmatpush3.bf16.msra.mxu1 %v1864_v15 }
  0xec   :  { %1650 = vmatpush3.bf16.msra.mxu0 %v1857_v7  ;;  %1669 = vmatprep.subr.bf16.mxu1 %v2211_v0  ;;  %v1881_v7 = vld [vmem:[%s2698_s7 + $0x30] sm:$0xff]  }
  0xed   :  { %1651 = vmatprep.subr.bf16.mxu0 %v2211_v0 }
  0xef   :  { %1670 = vmatpush3.bf16.msra.mxu1 %v1865_v16 }
  0xf0   :  { %1652 = vmatpush3.bf16.msra.mxu0 %v1858_v8  ;;  %1671 = vmatprep.subr.bf16.mxu1 %v2211_v0  ;;  %v1882_v8 = vld [vmem:[%s2698_s7 + $0x38] sm:$0xff]  }
  0xf1   :  { %1677 = vmatprep.subr.bf16.mxu0 %v2211_v0 }
  0xf3   :  { %1654 = vmatmul.mubr.bf16.vlgmr.msra.gmra.mrb[0].mxu0 %v199_v9  ;;  %1672 = vmatpush3.bf16.msra.mxu1 %v1866_v17  ;;  %v1475_v9 = vld [vmem:[#allocation7] ss:$0 sm:$0xff] }
  0xf4   :  { %1693 = vmatprep.mubr.msk.bf16.mxu0 %vm2212_vm0, %v2211_v0  ;;  %1697 = vmatprep.subr.bf16.mxu1 %v2211_v0 }
  0xf5   :  { %1678 = vmatpush3.bf16.msra.mxu0 %v1867_v37  ;;  %v1892_v37 = vld [vmem:[#allocation10 + $0x8] sm:$0xff]  }
  0xf6   :  { %1679 = vmatprep.subr.bf16.mxu0 %v2211_v0 }
  0xf9   :  { %1680 = vmatpush3.bf16.msra.mxu0 %v1868_v38  ;;  %v1893_v38 = vld [vmem:[#allocation10 + $0x10] sm:$0xff]  }
  0xfa   :  { %1681 = vmatprep.subr.bf16.mxu0 %v2211_v0 }
  0xfd   :  { %1682 = vmatpush3.bf16.msra.mxu0 %v1869_v39  ;;  %v1894_v39 = vld [vmem:[#allocation10 + $0x18] sm:$0xff]  }
  0xfe   :  { %1683 = vmatprep.subr.bf16.mxu0 %v2211_v0 }
 0x101   :  { %1684 = vmatpush3.bf16.msra.mxu0 %v1870_v40  ;;  %v1895_v40 = vld [vmem:[#allocation10 + $0x20] sm:$0xff]  }
 0x102   :  { %1685 = vmatprep.subr.bf16.mxu0 %v2211_v0 }
 0x105   :  { %1686 = vmatpush3.bf16.msra.mxu0 %v1871_v41  ;;  %v1896_v41 = vld [vmem:[#allocation10 + $0x28] sm:$0xff]  }
 0x106   :  { %1687 = vmatprep.subr.bf16.mxu0 %v2211_v0 }
 0x109   :  { %1688 = vmatpush3.bf16.msra.mxu0 %v1872_v42  ;;  %v1897_v42 = vld [vmem:[#allocation10 + $0x30] sm:$0xff]  }
 0x10a   :  { %1689 = vmatprep.subr.bf16.mxu0 %v2211_v0 }
 0x10d   :  { %1690 = vmatpush3.bf16.msra.mxu0 %v1873_v43  ;;  %v1484_v43 = vld [vmem:[%s2699_s8] ss:$0 sm:$0xff] }
 0x10e   :  { %1691 = vmatprep.subr.bf16.mxu0 %v2211_v0 }
 0x111   :  { %1692 = vmatpush3.bf16.msra.mxu0 %v1874_v44 }
 0x112   :  { %1717 = vmatprep.subr.bf16.mxu0 %v2211_v0 }
 0x1c6   :  { %v305_v19 = vpop.f32.mrb[0].mxu0 }
 0x1c7   :  { %v306_v20 = vadd.f32 %v1457_v18, %v305_v19  ;;  %v1655_v21 = vpop.f32.mrb[1].mxu0 }
 0x1c8   :  { %v308_v22 = vpop.f32.mrb[2].mxu0 }
 0x1c9   :  { %v312_v23 = vmin.f32 %v306_v20, 20.0  ;;  %v1656_v24 = vpop.f32.mrb[3].mxu0  ;;  %vm311_vm2 = vcmp.gt.f32.partialorder %v306_v20, 20.0 }
 0x1cb   :  { %v313_v25 = vmul.f32 1.442695, %v312_v23 }
 0x1cd   :  { %1931 = vpow2.f32 %v313_v25 }
 0x1d7   :  { %v1932_v26 = vpop.eup %1931 }
 0x1d8   :  { %v315_v27 = vadd.f32 1.0, %v1932_v26  ;;  %v318_v28 = vmul.f32 -0.5, %v1932_v26  ;;  %v321_v30 = vand.u32 2147483647, %v1932_v26 }
 0x1da   :  { %1933 = vlog2.f32 %v315_v27  ;;  %v319_v29 = vadd.f32 1.0, %v318_v28  ;;  %vm322_vm1 = vcmp.lt.f32.partialorder %v321_v30, 0.0004427343  ;;  %v1883_v28 = vld [vmem:[#allocation9] sm:$0xff]   ;;  %v1885_v30 = vld [vmem:[#allocation9 + $0x10] sm:$0xff]  }
 0x1dc   :  { %v320_v33 = vmul.f32 %v1932_v26, %v319_v29  ;;  %v1884_v29 = vld [vmem:[#allocation9 + $0x8] sm:$0xff]  }
 0x1e4   :  { %v1934_v31 = vpop.eup %1933 }
 0x1e5   :  { %v317_v32 = vmul.f32 0.6931472, %v1934_v31  ;;  %v1886_v31 = vld [vmem:[#allocation9 + $0x18] sm:$0xff]  }
 0x1e7   :  { %v323_v34 = vsel %vm322_vm1, %v320_v33, %v317_v32  ;;  %v1887_v32 = vld [vmem:[#allocation9 + $0x20] sm:$0xff]   ;;  %v1888_v33 = vld [vmem:[#allocation9 + $0x28] sm:$0xff]  }
 0x1e8   :  { %v324_v35 = vsel %vm311_vm2, %v306_v20, %v323_v34  ;;  %v1889_v34 = vld [vmem:[#allocation9 + $0x30] sm:$0xff]  }
 0x1e9   :  { %v342_v36 = vpack.c.bf16 %v324_v35, %v324_v35  ;;  %v1890_v35 = vld [vmem:[#allocation9 + $0x38] sm:$0xff]  }
 0x1eb   :  { %1674 = vmatmul.mubr.bf16.vlgmr.msra.gmra.mrb[0].mxu1 %v342_v36  ;;  %v1891_v36 = vld [vmem:[#allocation10] sm:$0xff]  }
 0x1ec   :  { %1713 = vmatprep.mubr.msk.bf16.mxu1 %vm2212_vm0, %v2211_v0  ;;  %1698 = vmatpush3.bf16.msra.mxu1 %v1875_v1 }
 0x1ed   :  { %1699 = vmatprep.subr.bf16.mxu1 %v2211_v0 }
 0x1f0   :  { %1700 = vmatpush3.bf16.msra.mxu1 %v1876_v2 }
 0x1f1   :  { %1701 = vmatprep.subr.bf16.mxu1 %v2211_v0 }
 0x1f4   :  { %1702 = vmatpush3.bf16.msra.mxu1 %v1877_v3 }
 0x1f5   :  { %1703 = vmatprep.subr.bf16.mxu1 %v2211_v0 }
 0x1f8   :  { %1704 = vmatpush3.bf16.msra.mxu1 %v1878_v4 }
 0x1f9   :  { %1705 = vmatprep.subr.bf16.mxu1 %v2211_v0 }
 0x1fc   :  { %1706 = vmatpush3.bf16.msra.mxu1 %v1879_v5 }
 0x1fd   :  { %1707 = vmatprep.subr.bf16.mxu1 %v2211_v0 }
 0x200   :  { %1708 = vmatpush3.bf16.msra.mxu1 %v1880_v6 }
 0x201   :  { %1709 = vmatprep.subr.bf16.mxu1 %v2211_v0 }
 0x204   :  { %1710 = vmatpush3.bf16.msra.mxu1 %v1881_v7  ;;  %v1899_v7 = vld [vmem:[#allocation12] sm:$0xff]  }
 0x205   :  { %1711 = vmatprep.subr.bf16.mxu1 %v2211_v0 }
 0x208   :  { %1712 = vmatpush3.bf16.msra.mxu1 %v1882_v8  ;;  %v1900_v8 = vld [vmem:[#allocation12 + $0x8] sm:$0xff]  }
 0x209   :  { %1737 = vmatprep.subr.bf16.mxu1 %v2211_v0 }
 0x2be   :  { %v431_v46 = vpop.f32.mrb[0].mxu1 }
 0x2bf   :  { %v432_v47 = vadd.f32 %v1466_v45, %v431_v46  ;;  %v1675_v48 = vpop.f32.mrb[1].mxu1 }
 0x2c0   :  { %v434_v49 = vpop.f32.mrb[2].mxu1 }
 0x2c1   :  { %v438_v50 = vmin.f32 %v432_v47, 20.0  ;;  %v1676_v51 = vpop.f32.mrb[3].mxu1  ;;  %vm437_vm4 = vcmp.gt.f32.partialorder %v432_v47, 20.0 }
 0x2c3   :  { %v439_v52 = vmul.f32 1.442695, %v438_v50 }
 0x2c5   :  { %1935 = vpow2.f32 %v439_v52 }
 0x2cf   :  { %v1936_v53 = vpop.eup %1935 }
 0x2d0   :  { %v441_v54 = vadd.f32 1.0, %v1936_v53  ;;  %v444_v55 = vmul.f32 -0.5, %v1936_v53  ;;  %v447_v57 = vand.u32 2147483647, %v1936_v53 }
 0x2d2   :  { %1937 = vlog2.f32 %v441_v54  ;;  %v445_v56 = vadd.f32 1.0, %v444_v55  ;;  %vm448_vm3 = vcmp.lt.f32.partialorder %v447_v57, 0.0004427343 }
 0x2d4   :  { %v446_v60 = vmul.f32 %v1936_v53, %v445_v56 }
 0x2dc   :  { %v1938_v58 = vpop.eup %1937 }
 0x2dd   :  { %v443_v59 = vmul.f32 0.6931472, %v1938_v58 }
 0x2df   :  { %v449_v61 = vsel %vm448_vm3, %v446_v60, %v443_v59 }
 0x2e0   :  { %v450_v62 = vsel %vm437_vm4, %v432_v47, %v449_v61 }
 0x2e1   :  { %v468_v63 = vpack.c.bf16 %v450_v62, %v450_v62  ;;  %v1898_v62 = vld [vmem:[#allocation10 + $0x38] sm:$0xff]  }
 0x2e3   :  { %1694 = vmatmul.mubr.bf16.vlgmr.msra.gmra.mrb[4].mxu0 %v468_v63  ;;  %v1493_v63 = vld [vmem:[%s2701_s10] ss:$0 sm:$0xff] }
 0x2e4   :  { %1733 = vmatprep.mubr.msk.bf16.mxu0 %vm2212_vm0, %v2211_v0  ;;  %1718 = vmatpush3.bf16.msra.mxu0 %v1883_v28 }
 0x2e5   :  { %1719 = vmatprep.subr.bf16.mxu0 %v2211_v0 }
 0x2e8   :  { %1720 = vmatpush3.bf16.msra.mxu0 %v1884_v29 }
 0x2e9   :  { %1721 = vmatprep.subr.bf16.mxu0 %v2211_v0 }
 0x2ec   :  { %1722 = vmatpush3.bf16.msra.mxu0 %v1885_v30 }
 0x2ed   :  { %1723 = vmatprep.subr.bf16.mxu0 %v2211_v0 }
 0x2f0   :  { %1724 = vmatpush3.bf16.msra.mxu0 %v1886_v31 }
 0x2f1   :  { %1725 = vmatprep.subr.bf16.mxu0 %v2211_v0 }
 0x2f4   :  { %1726 = vmatpush3.bf16.msra.mxu0 %v1887_v32 }
 0x2f5   :  { %1727 = vmatprep.subr.bf16.mxu0 %v2211_v0 }
 0x2f8   :  { %1728 = vmatpush3.bf16.msra.mxu0 %v1888_v33 }
 0x2f9   :  { %1729 = vmatprep.subr.bf16.mxu0 %v2211_v0 }
 0x2fc   :  { %1730 = vmatpush3.bf16.msra.mxu0 %v1889_v34  ;;  %v1907_v34 = vld [vmem:[#allocation13] sm:$0xff]  }
 0x2fd   :  { %1731 = vmatprep.subr.bf16.mxu0 %v2211_v0 }
 0x300   :  { %1732 = vmatpush3.bf16.msra.mxu0 %v1890_v35  ;;  %v1908_v35 = vld [vmem:[#allocation13 + $0x8] sm:$0xff]  }
 0x301   :  { %1757 = vmatprep.subr.bf16.mxu0 %v2211_v0 }
 0x3b6   :  { %v557_v10 = vpop.f32.mrb[4].mxu0 }
 0x3b7   :  { %v558_v11 = vadd.f32 %v1475_v9, %v557_v10  ;;  %v1695_v12 = vpop.f32.mrb[5].mxu0  ;;  %v1901_v9 = vld [vmem:[#allocation12 + $0x10] sm:$0xff]   ;;  %v1902_v10 = vld [vmem:[#allocation12 + $0x18] sm:$0xff]  }
 0x3b8   :  { %v560_v13 = vpop.f32.mrb[6].mxu0  ;;  %v1904_v12 = vld [vmem:[#allocation12 + $0x28] sm:$0xff]  }
 0x3b9   :  { %v564_v14 = vmin.f32 %v558_v11, 20.0  ;;  %v1696_v15 = vpop.f32.mrb[7].mxu0  ;;  %vm563_vm6 = vcmp.gt.f32.partialorder %v558_v11, 20.0  ;;  %v1905_v13 = vld [vmem:[#allocation12 + $0x30] sm:$0xff]  }
 0x3ba   :  { %v1502_v15 = vld [vmem:[%s2703_s12] ss:$0 sm:$0xff] }
 0x3bb   :  { %v565_v16 = vmul.f32 1.442695, %v564_v14  ;;  %v1906_v14 = vld [vmem:[#allocation12 + $0x38] sm:$0xff]  }
 0x3bd   :  { %1939 = vpow2.f32 %v565_v16 }
 0x3c7   :  { %v1940_v17 = vpop.eup %1939 }
 0x3c8   :  { %v567_v18 = vadd.f32 1.0, %v1940_v17  ;;  %v570_v19 = vmul.f32 -0.5, %v1940_v17  ;;  %v573_v21 = vand.u32 2147483647, %v1940_v17 }
 0x3ca   :  { %1941 = vlog2.f32 %v567_v18  ;;  %v571_v20 = vadd.f32 1.0, %v570_v19  ;;  %vm574_vm5 = vcmp.lt.f32.partialorder %v573_v21, 0.0004427343 }
 0x3cc   :  { %v572_v24 = vmul.f32 %v1940_v17, %v571_v20 }
 0x3d4   :  { %v1942_v22 = vpop.eup %1941 }
 0x3d5   :  { %v569_v23 = vmul.f32 0.6931472, %v1942_v22 }
 0x3d7   :  { %v575_v25 = vsel %vm574_vm5, %v572_v24, %v569_v23 }
 0x3d8   :  { %v576_v26 = vsel %vm563_vm6, %v558_v11, %v575_v25  ;;  %v1903_v11 = vld [vmem:[#allocation12 + $0x20] sm:$0xff]  }
 0x3d9   :  { %v594_v27 = vpack.c.bf16 %v576_v26, %v576_v26 }
 0x3db   :  { %1714 = vmatmul.mubr.bf16.vlgmr.msra.gmra.mrb[4].mxu1 %v594_v27 }
 0x3dc   :  { %1753 = vmatprep.mubr.msk.bf16.mxu1 %vm2212_vm0, %v2211_v0  ;;  %1738 = vmatpush3.bf16.msra.mxu1 %v1891_v36  ;;  %v1909_v36 = vld [vmem:[#allocation13 + $0x10] sm:$0xff]  }
 0x3dd   :  { %1739 = vmatprep.subr.bf16.mxu1 %v2211_v0 }
 0x3e0   :  { %1740 = vmatpush3.bf16.msra.mxu1 %v1892_v37  ;;  %v1910_v37 = vld [vmem:[#allocation13 + $0x18] sm:$0xff]  }
 0x3e1   :  { %1741 = vmatprep.subr.bf16.mxu1 %v2211_v0 }
 0x3e4   :  { %1742 = vmatpush3.bf16.msra.mxu1 %v1893_v38  ;;  %v1911_v38 = vld [vmem:[#allocation13 + $0x20] sm:$0xff]  }
 0x3e5   :  { %1743 = vmatprep.subr.bf16.mxu1 %v2211_v0 }
 0x3e8   :  { %1744 = vmatpush3.bf16.msra.mxu1 %v1894_v39  ;;  %v1912_v39 = vld [vmem:[#allocation13 + $0x28] sm:$0xff]  }
 0x3e9   :  { %1745 = vmatprep.subr.bf16.mxu1 %v2211_v0 }
 0x3ec   :  { %1746 = vmatpush3.bf16.msra.mxu1 %v1895_v40  ;;  %v1913_v40 = vld [vmem:[#allocation13 + $0x30] sm:$0xff]  }
 0x3ed   :  { %1747 = vmatprep.subr.bf16.mxu1 %v2211_v0 }
 0x3f0   :  { %1748 = vmatpush3.bf16.msra.mxu1 %v1896_v41  ;;  %v1914_v41 = vld [vmem:[#allocation13 + $0x38] sm:$0xff]  }
 0x3f1   :  { %1749 = vmatprep.subr.bf16.mxu1 %v2211_v0 }
 0x3f4   :  { %1750 = vmatpush3.bf16.msra.mxu1 %v1897_v42  ;;  %v1511_v42 = vld [vmem:[%s2705_s14] ss:$0 sm:$0xff] }
 0x3f5   :  { %1751 = vmatprep.subr.bf16.mxu1 %v2211_v0 }
 0x3f8   :  { %1752 = vmatpush3.bf16.msra.mxu1 %v1898_v62  ;;  %v1916_v62 = vld [vmem:[#allocation15 + $0x8] sm:$0xff]  }
 0x3f9   :  { %1777 = vmatprep.subr.bf16.mxu1 %v2211_v0 }
 0x4ae   :  { %v683_v44 = vpop.f32.mrb[4].mxu1 }
 0x4af   :  { %v684_v45 = vadd.f32 %v1484_v43, %v683_v44  ;;  %v1715_v46 = vpop.f32.mrb[5].mxu1 }
 0x4b0   :  { %v686_v47 = vpop.f32.mrb[6].mxu1 }
 0x4b1   :  { %v690_v48 = vmin.f32 %v684_v45, 20.0  ;;  %v1716_v49 = vpop.f32.mrb[7].mxu1  ;;  %vm689_vm8 = vcmp.gt.f32.partialorder %v684_v45, 20.0 }
 0x4b3   :  { %v691_v50 = vmul.f32 1.442695, %v690_v48 }
 0x4b5   :  { %1943 = vpow2.f32 %v691_v50 }
 0x4bf   :  { %v1944_v51 = vpop.eup %1943 }
 0x4c0   :  { %v693_v52 = vadd.f32 1.0, %v1944_v51  ;;  %v696_v53 = vmul.f32 -0.5, %v1944_v51  ;;  %v699_v55 = vand.u32 2147483647, %v1944_v51 }
 0x4c2   :  { %1945 = vlog2.f32 %v693_v52  ;;  %v697_v54 = vadd.f32 1.0, %v696_v53  ;;  %vm700_vm7 = vcmp.lt.f32.partialorder %v699_v55, 0.0004427343 }
 0x4c4   :  { %v698_v58 = vmul.f32 %v1944_v51, %v697_v54 }
 0x4cc   :  { %v1946_v56 = vpop.eup %1945 }
 0x4cd   :  { %v695_v57 = vmul.f32 0.6931472, %v1946_v56 }
 0x4cf   :  { %v701_v59 = vsel %vm700_vm7, %v698_v58, %v695_v57 }
 0x4d0   :  { %v702_v60 = vsel %vm689_vm8, %v684_v45, %v701_v59 }
 0x4d1   :  { %v720_v61 = vpack.c.bf16 %v702_v60, %v702_v60 }
 0x4d3   :  { %1734 = vmatmul.mubr.bf16.vlgmr.msra.gmra.mrb[8].mxu0 %v720_v61  ;;  %v1915_v61 = vld [vmem:[#allocation15] sm:$0xff]  }
 0x4d4   :  { %1773 = vmatprep.mubr.msk.bf16.mxu0 %vm2212_vm0, %v2211_v0  ;;  %1758 = vmatpush3.bf16.msra.mxu0 %v1899_v7 }
 0x4d5   :  { %1759 = vmatprep.subr.bf16.mxu0 %v2211_v0 }
 0x4d8   :  { %1760 = vmatpush3.bf16.msra.mxu0 %v1900_v8 }
 0x4d9   :  { %1761 = vmatprep.subr.bf16.mxu0 %v2211_v0 }
 0x4dc   :  { %1762 = vmatpush3.bf16.msra.mxu0 %v1901_v9 }
 0x4dd   :  { %1763 = vmatprep.subr.bf16.mxu0 %v2211_v0 }
 0x4e0   :  { %1764 = vmatpush3.bf16.msra.mxu0 %v1902_v10 }
 0x4e1   :  { %1765 = vmatprep.subr.bf16.mxu0 %v2211_v0 }
 0x4e4   :  { %1766 = vmatpush3.bf16.msra.mxu0 %v1903_v11 }
 0x4e5   :  { %1767 = vmatprep.subr.bf16.mxu0 %v2211_v0 }
 0x4e8   :  { %1768 = vmatpush3.bf16.msra.mxu0 %v1904_v12 }
 0x4e9   :  { %1769 = vmatprep.subr.bf16.mxu0 %v2211_v0 }
 0x4ec   :  { %1770 = vmatpush3.bf16.msra.mxu0 %v1905_v13 }
 0x4ed   :  { %1771 = vmatprep.subr.bf16.mxu0 %v2211_v0 }
 0x4f0   :  { %1772 = vmatpush3.bf16.msra.mxu0 %v1906_v14 }
 0x4f1   :  { %1797 = vmatprep.subr.bf16.mxu0 %v2211_v0 }
 0x5a6   :  { %v809_v1 = vpop.f32.mrb[8].mxu0 }
 0x5a7   :  { %v810_v2 = vadd.f32 %v1493_v63, %v809_v1  ;;  %v1735_v3 = vpop.f32.mrb[9].mxu0  ;;  %v1917_v63 = vld [vmem:[#allocation15 + $0x10] sm:$0xff]   ;;  %v1918_v1 = vld [vmem:[#allocation15 + $0x18] sm:$0xff]  }
 0x5a8   :  { %v812_v4 = vpop.f32.mrb[10].mxu0  ;;  %v1920_v3 = vld [vmem:[#allocation15 + $0x28] sm:$0xff]  }
 0x5a9   :  { %v832_v5 = vpack.c.bf16 %v810_v2, %v810_v2  ;;  %v1736_v6 = vpop.f32.mrb[11].mxu0  ;;  %v1919_v2 = vld [vmem:[#allocation15 + $0x20] sm:$0xff]   ;;  %v1921_v4 = vld [vmem:[#allocation15 + $0x30] sm:$0xff]  }
 0x5aa   :  { %v1520_v6 = vld [vmem:[%s2707_s16] ss:$0 sm:$0xff] }
 0x5ab   :  { %1754 = vmatmul.mubr.bf16.vlgmr.msra.gmra.mrb[8].mxu1 %v832_v5  ;;  %v1922_v5 = vld [vmem:[#allocation15 + $0x38] sm:$0xff]  }
 0x5ac   :  { %1793 = vmatprep.mubr.msk.bf16.mxu1 %vm2212_vm0, %v2211_v0  ;;  %1778 = vmatpush3.bf16.msra.mxu1 %v1907_v34 }
 0x5ad   :  { %1779 = vmatprep.subr.bf16.mxu1 %v2211_v0 }
 0x5b0   :  { %1780 = vmatpush3.bf16.msra.mxu1 %v1908_v35 }
 0x5b1   :  { %1781 = vmatprep.subr.bf16.mxu1 %v2211_v0 }
 0x5b4   :  { %1782 = vmatpush3.bf16.msra.mxu1 %v1909_v36 }
 0x5b5   :  { %1783 = vmatprep.subr.bf16.mxu1 %v2211_v0 }
 0x5b8   :  { %1784 = vmatpush3.bf16.msra.mxu1 %v1910_v37 }
 0x5b9   :  { %1785 = vmatprep.subr.bf16.mxu1 %v2211_v0 }
 0x5bc   :  { %1786 = vmatpush3.bf16.msra.mxu1 %v1911_v38 }
 0x5bd   :  { %1787 = vmatprep.subr.bf16.mxu1 %v2211_v0 }
 0x5c0   :  { %1788 = vmatpush3.bf16.msra.mxu1 %v1912_v39 }
 0x5c1   :  { %1789 = vmatprep.subr.bf16.mxu1 %v2211_v0 }
 0x5c4   :  { %1790 = vmatpush3.bf16.msra.mxu1 %v1913_v40 }
 0x5c5   :  { %1791 = vmatprep.subr.bf16.mxu1 %v2211_v0 }
 0x5c8   :  { %1792 = vmatpush3.bf16.msra.mxu1 %v1914_v41 }
 0x5c9   :  { %1817 = vmatprep.subr.bf16.mxu1 %v2211_v0 }
 0x67e   :  { %v921_v16 = vpop.f32.mrb[8].mxu1 }
 0x67f   :  { %v922_v17 = vadd.f32 %v1502_v15, %v921_v16  ;;  %v1755_v18 = vpop.f32.mrb[9].mxu1 }
 0x680   :  { %v924_v19 = vpop.f32.mrb[10].mxu1 }
 0x681   :  { %v928_v20 = vmin.f32 %v922_v17, 20.0  ;;  %v1756_v21 = vpop.f32.mrb[11].mxu1  ;;  %vm927_vm10 = vcmp.gt.f32.partialorder %v922_v17, 20.0 }
 0x683   :  { %v929_v22 = vmul.f32 1.442695, %v928_v20 }
 0x685   :  { %1947 = vpow2.f32 %v929_v22 }
 0x68f   :  { %v1948_v23 = vpop.eup %1947 }
 0x690   :  { %v931_v24 = vadd.f32 1.0, %v1948_v23  ;;  %v934_v25 = vmul.f32 -0.5, %v1948_v23  ;;  %v937_v27 = vand.u32 2147483647, %v1948_v23 }
 0x692   :  { %1949 = vlog2.f32 %v931_v24  ;;  %v935_v26 = vadd.f32 1.0, %v934_v25  ;;  %vm938_vm9 = vcmp.lt.f32.partialorder %v937_v27, 0.0004427343  ;;  %v1923_v25 = vld [vmem:[#allocation16] sm:$0xff]   ;;  %v1925_v27 = vld [vmem:[#allocation16 + $0x10] sm:$0xff]  }
 0x694   :  { %v936_v30 = vmul.f32 %v1948_v23, %v935_v26  ;;  %v1924_v26 = vld [vmem:[#allocation16 + $0x8] sm:$0xff]  }
 0x69c   :  { %v1950_v28 = vpop.eup %1949 }
 0x69d   :  { %v933_v29 = vmul.f32 0.6931472, %v1950_v28  ;;  %v1926_v28 = vld [vmem:[#allocation16 + $0x18] sm:$0xff]  }
 0x69f   :  { %v939_v31 = vsel %vm938_vm9, %v936_v30, %v933_v29  ;;  %v1927_v29 = vld [vmem:[#allocation16 + $0x20] sm:$0xff]   ;;  %v1928_v30 = vld [vmem:[#allocation16 + $0x28] sm:$0xff]  }
 0x6a0   :  { %v940_v32 = vsel %vm927_vm10, %v922_v17, %v939_v31  ;;  %v1929_v31 = vld [vmem:[#allocation16 + $0x30] sm:$0xff]  }
 0x6a1   :  { %v958_v33 = vpack.c.bf16 %v940_v32, %v940_v32  ;;  %v1930_v32 = vld [vmem:[#allocation16 + $0x38] sm:$0xff]  }
 0x6a3   :  { %1774 = vmatmul.mubr.bf16.vlgmr.msra.gmra.mrb[12].mxu0 %v958_v33  ;;  %v1529_v33 = vld [vmem:[%s2709_s18] ss:$0 sm:$0xff] }
 0x6a4   :  { %1813 = vmatprep.mubr.msk.bf16.mxu0 %vm2212_vm0, %v2211_v0  ;;  %1798 = vmatpush3.bf16.msra.mxu0 %v1915_v61 }
 0x6a5   :  { %1799 = vmatprep.subr.bf16.mxu0 %v2211_v0 }
 0x6a8   :  { %1800 = vmatpush3.bf16.msra.mxu0 %v1916_v62 }
 0x6a9   :  { %1801 = vmatprep.subr.bf16.mxu0 %v2211_v0 }
 0x6ac   :  { %1802 = vmatpush3.bf16.msra.mxu0 %v1917_v63 }
 0x6ad   :  { %1803 = vmatprep.subr.bf16.mxu0 %v2211_v0 }
 0x6b0   :  { %1804 = vmatpush3.bf16.msra.mxu0 %v1918_v1 }
 0x6b1   :  { %1805 = vmatprep.subr.bf16.mxu0 %v2211_v0 }
 0x6b4   :  { %1806 = vmatpush3.bf16.msra.mxu0 %v1919_v2 }
 0x6b5   :  { %1807 = vmatprep.subr.bf16.mxu0 %v2211_v0 }
 0x6b8   :  { %1808 = vmatpush3.bf16.msra.mxu0 %v1920_v3 }
 0x6b9   :  { %1809 = vmatprep.subr.bf16.mxu0 %v2211_v0 }
 0x6bc   :  { %1810 = vmatpush3.bf16.msra.mxu0 %v1921_v4 }
 0x6bd   :  { %1811 = vmatprep.subr.bf16.mxu0 %v2211_v0 }
 0x6c0   :  { %1812 = vmatpush3.bf16.msra.mxu0 %v1922_v5 }
 0x776   :  { %v1047_v43 = vpop.f32.mrb[12].mxu0 }
 0x777   :  { %v1048_v44 = vadd.f32 %v1511_v42, %v1047_v43  ;;  %v1775_v45 = vpop.f32.mrb[13].mxu0 }
 0x778   :  { %v1050_v46 = vpop.f32.mrb[14].mxu0 }
 0x779   :  { %v1054_v47 = vmin.f32 %v1048_v44, 20.0  ;;  %v1776_v48 = vpop.f32.mrb[15].mxu0  ;;  %vm1053_vm12 = vcmp.gt.f32.partialorder %v1048_v44, 20.0 }
 0x77b   :  { %v1055_v49 = vmul.f32 1.442695, %v1054_v47 }
 0x77d   :  { %1951 = vpow2.f32 %v1055_v49 }
 0x787   :  { %v1952_v50 = vpop.eup %1951 }
 0x788   :  { %v1057_v51 = vadd.f32 1.0, %v1952_v50  ;;  %v1060_v52 = vmul.f32 -0.5, %v1952_v50  ;;  %v1063_v54 = vand.u32 2147483647, %v1952_v50 }
 0x78a   :  { %1953 = vlog2.f32 %v1057_v51  ;;  %v1061_v53 = vadd.f32 1.0, %v1060_v52  ;;  %vm1064_vm11 = vcmp.lt.f32.partialorder %v1063_v54, 0.0004427343  ;;  %v1538_v51 = vld [vmem:[%s2711_s20] ss:$0 sm:$0xff] }
 0x78c   :  { %v1062_v57 = vmul.f32 %v1952_v50, %v1061_v53 }
 0x794   :  { %v1954_v55 = vpop.eup %1953 }
 0x795   :  { %v1059_v56 = vmul.f32 0.6931472, %v1954_v55 }
 0x797   :  { %v1065_v58 = vsel %vm1064_vm11, %v1062_v57, %v1059_v56 }
 0x798   :  { %v1066_v59 = vsel %vm1053_vm12, %v1048_v44, %v1065_v58 }
 0x799   :  { %v1084_v60 = vpack.c.bf16 %v1066_v59, %v1066_v59 }
 0x79b   :  { %1794 = vmatmul.mubr.bf16.vlgmr.msra.gmra.mrb[12].mxu1 %v1084_v60 }
 0x79c   :  { %1833 = vmatprep.mubr.msk.bf16.mxu1 %vm2212_vm0, %v2211_v0  ;;  %1818 = vmatpush3.bf16.msra.mxu1 %v1923_v25 }
 0x79d   :  { %1819 = vmatprep.subr.bf16.mxu1 %v2211_v0 }
 0x7a0   :  { %1820 = vmatpush3.bf16.msra.mxu1 %v1924_v26 }
 0x7a1   :  { %1821 = vmatprep.subr.bf16.mxu1 %v2211_v0 }
 0x7a4   :  { %1822 = vmatpush3.bf16.msra.mxu1 %v1925_v27 }
 0x7a5   :  { %1823 = vmatprep.subr.bf16.mxu1 %v2211_v0 }
 0x7a8   :  { %1824 = vmatpush3.bf16.msra.mxu1 %v1926_v28 }
 0x7a9   :  { %1825 = vmatprep.subr.bf16.mxu1 %v2211_v0 }
 0x7ac   :  { %1826 = vmatpush3.bf16.msra.mxu1 %v1927_v29 }
 0x7ad   :  { %1827 = vmatprep.subr.bf16.mxu1 %v2211_v0 }
 0x7b0   :  { %1828 = vmatpush3.bf16.msra.mxu1 %v1928_v30 }
 0x7b1   :  { %1829 = vmatprep.subr.bf16.mxu1 %v2211_v0 }
 0x7b4   :  { %1830 = vmatpush3.bf16.msra.mxu1 %v1929_v31 }
 0x7b5   :  { %1831 = vmatprep.subr.bf16.mxu1 %v2211_v0 }
 0x7b8   :  { %1832 = vmatpush3.bf16.msra.mxu1 %v1930_v32 }
 0x86e   :  { %v1173_v7 = vpop.f32.mrb[12].mxu1 }
 0x86f   :  { %v1174_v8 = vadd.f32 %v1520_v6, %v1173_v7  ;;  %v1795_v9 = vpop.f32.mrb[13].mxu1 }
 0x870   :  { %v1176_v10 = vpop.f32.mrb[14].mxu1 }
 0x871   :  { %v1180_v11 = vmin.f32 %v1174_v8, 20.0  ;;  %v1796_v12 = vpop.f32.mrb[15].mxu1  ;;  %vm1179_vm14 = vcmp.gt.f32.partialorder %v1174_v8, 20.0 }
 0x873   :  { %v1181_v13 = vmul.f32 1.442695, %v1180_v11 }
 0x875   :  { %1955 = vpow2.f32 %v1181_v13 }
 0x87f   :  { %v1956_v14 = vpop.eup %1955 }
 0x880   :  { %v1183_v15 = vadd.f32 1.0, %v1956_v14  ;;  %v1186_v16 = vmul.f32 -0.5, %v1956_v14  ;;  %v1189_v18 = vand.u32 2147483647, %v1956_v14 }
 0x882   :  { %1957 = vlog2.f32 %v1183_v15  ;;  %v1187_v17 = vadd.f32 1.0, %v1186_v16  ;;  %vm1190_vm13 = vcmp.lt.f32.partialorder %v1189_v18, 0.0004427343 }
 0x884   :  { %v1188_v21 = vmul.f32 %v1956_v14, %v1187_v17 }
 0x88c   :  { %v1958_v19 = vpop.eup %1957 }
 0x88d   :  { %v1185_v20 = vmul.f32 0.6931472, %v1958_v19 }
 0x88f   :  { %v1191_v22 = vsel %vm1190_vm13, %v1188_v21, %v1185_v20 }
 0x890   :  { %v1192_v23 = vsel %vm1179_vm14, %v1174_v8, %v1191_v22 }
 0x891   :  { %v1210_v24 = vpack.c.bf16 %v1192_v23, %v1192_v23 }
 0x893   :  { %1814 = vmatmul.mubr.bf16.vlgmr.msra.gmra.mrb[16].mxu0 %v1210_v24 }
 0x966   :  { %v1299_v34 = vpop.f32.mrb[16].mxu0 }
 0x967   :  { %v1300_v35 = vadd.f32 %v1529_v33, %v1299_v34  ;;  %v1815_v36 = vpop.f32.mrb[17].mxu0 }
 0x968   :  { %v1302_v37 = vpop.f32.mrb[18].mxu0 }
 0x969   :  { %v1306_v38 = vmin.f32 %v1300_v35, 20.0  ;;  %v1816_v39 = vpop.f32.mrb[19].mxu0  ;;  %vm1305_vm0 = vcmp.gt.f32.partialorder %v1300_v35, 20.0 }
 0x96b   :  { %v1307_v40 = vmul.f32 1.442695, %v1306_v38 }
 0x96d   :  { %1959 = vpow2.f32 %v1307_v40 }
 0x977   :  { %v1960_v41 = vpop.eup %1959 }
 0x978   :  { %v1309_v42 = vadd.f32 1.0, %v1960_v41  ;;  %v1312_v43 = vmul.f32 -0.5, %v1960_v41  ;;  %v1315_v0 = vand.u32 2147483647, %v1960_v41 }
 0x97a   :  { %1961 = vlog2.f32 %v1309_v42  ;;  %v1313_v44 = vadd.f32 1.0, %v1312_v43  ;;  %vm1316_vm15 = vcmp.lt.f32.partialorder %v1315_v0, 0.0004427343 }
 0x97c   :  { %v1314_v47 = vmul.f32 %v1960_v41, %v1313_v44 }
 0x984   :  { %v1962_v45 = vpop.eup %1961 }
 0x985   :  { %v1311_v46 = vmul.f32 0.6931472, %v1962_v45 }
 0x987   :  { %v1317_v48 = vsel %vm1316_vm15, %v1314_v47, %v1311_v46 }
 0x988   :  { %v1318_v49 = vsel %vm1305_vm0, %v1300_v35, %v1317_v48 }
 0x989   :  { %v1336_v50 = vpack.c.bf16 %v1318_v49, %v1318_v49 }
 0x98b   :  { %1834 = vmatmul.mubr.bf16.vlgmr.msra.gmra.mrb[16].mxu1 %v1336_v50 }
 0xa5e   :  { %v1425_v52 = vpop.f32.mrb[16].mxu1 }
 0xa5f   :  { %v1426_v53 = vadd.f32 %v1538_v51, %v1425_v52  ;;  %v1835_v54 = vpop.f32.mrb[17].mxu1 }
 0xa60   :  { %v1428_v55 = vpop.f32.mrb[18].mxu1 }
 0xa61   :  { %v1432_v56 = vmin.f32 %v1426_v53, 20.0  ;;  %v1836_v57 = vpop.f32.mrb[19].mxu1  ;;  %vm1431_vm2 = vcmp.gt.f32.partialorder %v1426_v53, 20.0 }
 0xa63   :  { %v1433_v58 = vmul.f32 1.442695, %v1432_v56 }
 0xa65   :  { %1963 = vpow2.f32 %v1433_v58 }
 0xa6f   :  { %v1964_v59 = vpop.eup %1963 }
 0xa70   :  { %v1435_v60 = vadd.f32 1.0, %v1964_v59  ;;  %v1438_v61 = vmul.f32 -0.5, %v1964_v59  ;;  %v1441_v63 = vand.u32 2147483647, %v1964_v59 }
 0xa72   :  { %1965 = vlog2.f32 %v1435_v60  ;;  %v1439_v62 = vadd.f32 1.0, %v1438_v61  ;;  %vm1442_vm1 = vcmp.lt.f32.partialorder %v1441_v63, 0.0004427343 }
 0xa74   :  { %v1440_v3 = vmul.f32 %v1964_v59, %v1439_v62 }
 0xa7c   :  { %v1966_v1 = vpop.eup %1965 }
 0xa7d   :  { %v1437_v2 = vmul.f32 0.6931472, %v1966_v1 }
 0xa7f   :  { %v1443_v4 = vsel %vm1442_vm1, %v1440_v3, %v1437_v2 }
 0xa80   :  { %v1444_v5 = vsel %vm1431_vm2, %v1426_v53, %v1443_v4 }
 0xa81   :  { %v1445_v6 = vpack.c.bf16 %v1444_v5, %v1444_v5 }
 0xa83   :  { %1446 = vst [vmem:[%s2712_s21] sm:$0xf] %v1445_v6 }
 0xa84   :  { %1451 = vsyncpa [#allocation3], 1 }
 0xa85   :  { %1452 = vsyncpa [#allocation5], 1 }
 0xa86   :  { %1453 = vsyncpa [#allocation8], 1 }
 0xa87   :  { %1454 = vsyncpa [#allocation11], 1 }
 0xa88   :  { %1455 = vsyncpa [#allocation14], 1 }
 0xa89   :  { %1456 = vsyncpa [#allocation17], 1 }

</bundles_post_ra>
